<compile_context>
chip_gen: v5e
topology: v5e:2x2
jax: 0.10.0
libtpu: 0.0.40
codegen_flags: <defaults>
</compile_context>

<pallas_src>
import functools

import jax
import jax.numpy as jnp
from jax import lax
from jax.experimental import pallas as pl
from jax.experimental.pallas import tpu as pltpu

_BF16 = jnp.bfloat16


def _layernorm(x, g, b, eps=1e-5):
    mu = jnp.mean(x, axis=-1, keepdims=True)
    var = jnp.mean((x - mu) ** 2, axis=-1, keepdims=True)
    return (x - mu) * lax.rsqrt(var + eps) * g + b


def _gelu_exact(x):
    return 0.5 * x * (1.0 + lax.erf(x * jnp.float32(0.7071067811865476)))


def _block_kernel(
    # inputs
    x_full_ref, x_tile_ref,
    wq_hbm, bq_ref, wk_hbm, wv_hbm, bv_ref, wo_hbm, bo_ref,
    g1_ref, be1_ref,
    w1_hbm, b1_ref, w2_hbm, b2_ref,
    g2_ref, be2_ref,
    # outputs
    o_ref,
    # scratch
    wq_vm, wk_vm, wv_vm, wo_vm, w1_vm, w2_vm,
    k_sc, v_sc, dma_sem,
    *, n_head):
    qi = pl.program_id(1)
    S = x_full_ref.shape[1]
    D = x_full_ref.shape[2]
    dh = D // n_head

    # ---- Once per batch element: pull weights into persistent (single-buffered) VMEM
    # ---- scratch and build the per-head K/V cache for the whole sequence. ------------
    @pl.when(qi == 0)
    def _load_weights_and_kv():
        copies = (
            pltpu.make_async_copy(wq_hbm, wq_vm, dma_sem.at[0]),
            pltpu.make_async_copy(wk_hbm, wk_vm, dma_sem.at[1]),
            pltpu.make_async_copy(wv_hbm, wv_vm, dma_sem.at[2]),
            pltpu.make_async_copy(wo_hbm, wo_vm, dma_sem.at[3]),
            pltpu.make_async_copy(w1_hbm, w1_vm, dma_sem.at[4]),
            pltpu.make_async_copy(w2_hbm, w2_vm, dma_sem.at[5]),
        )
        for c in copies:
            c.start()
        for c in copies:
            c.wait()

        x_full = x_full_ref[0]                                           # (S, D) f32
        ln1_full = _layernorm(x_full, g1_ref[...], be1_ref[...]).astype(_BF16)
        # scale (dh**-0.25) is already folded into wk / wq in the wrapper.
        k_full = jnp.dot(ln1_full, wk_vm[...], preferred_element_type=jnp.float32)
        v_full = jnp.dot(ln1_full, wv_vm[...], preferred_element_type=jnp.float32) + bv_ref[...]
        for h in range(n_head):
            sl = slice(h * dh, (h + 1) * dh)
            k_sc[h] = k_full[:, sl].astype(_BF16)
            v_sc[h] = v_full[:, sl].astype(_BF16)

    # ---- Per query tile ---------------------------------------------------------------
    x_t = x_tile_ref[0]                                                  # (TQ, D) f32
    ln1_t = _layernorm(x_t, g1_ref[...], be1_ref[...]).astype(_BF16)
    q_t = jnp.dot(ln1_t, wq_vm[...], preferred_element_type=jnp.float32) + bq_ref[...]
    q_heads = jnp.stack(
        [q_t[:, h * dh:(h + 1) * dh] for h in range(n_head)], axis=0
    ).astype(_BF16)                                                      # (H, TQ, dh)

    # Batched (over heads) attention on the MXU; softmax in f32.
    scores = jnp.einsum("hqc,hkc->hqk", q_heads, k_sc[...],
                        preferred_element_type=jnp.float32)              # (H, TQ, S)
    m = jnp.max(scores, axis=-1, keepdims=True)
    e = jnp.exp(scores - m)
    p = e * pl.reciprocal(jnp.sum(e, axis=-1, keepdims=True), approx=True)
    ctx = jnp.einsum("hqk,hkc->hqc", p.astype(_BF16), v_sc[...],
                     preferred_element_type=jnp.float32)                 # (H, TQ, dh)

    # Output projection: contract directly against per-head Wo (H, dh, D); no concat.
    per_head = jnp.einsum("hqc,hcd->hqd", ctx.astype(_BF16), wo_vm[...],
                          preferred_element_type=jnp.float32)            # (H, TQ, D)
    attn_out = jnp.sum(per_head, axis=0) + bo_ref[...]

    x1 = x_t + attn_out                                                  # residual in f32

    # MLP branch.
    ln2 = _layernorm(x1, g2_ref[...], be2_ref[...]).astype(_BF16)
    h1 = jnp.dot(ln2, w1_vm[...], preferred_element_type=jnp.float32) + b1_ref[...]
    h1 = _gelu_exact(h1).astype(_BF16)
    mlp = jnp.dot(h1, w2_vm[...], preferred_element_type=jnp.float32) + b2_ref[...]

    o_ref[0] = x1 + mlp


def _prepare_params(params, n_head):
    """Fold the dh**-0.25 scale into Wq/bq and Wk, cast big matrices to bf16,
    and reshape Wo into per-head (H, dh, D) layout."""
    D = params["wq_t"].shape[0]
    dh = D // n_head
    scale = jnp.float32(dh ** -0.25)
    return dict(
        wq=(params["wq_t"] * scale).astype(_BF16),
        bq=(params["bq"] * scale).astype(jnp.float32),
        wk=(params["wk_t"] * scale).astype(_BF16),
        wv=params["wv_t"].astype(_BF16),
        bv=params["bv"].astype(jnp.float32),
        wo=params["wo_t"].reshape(n_head, dh, D).astype(_BF16),
        bo=params["bo"].astype(jnp.float32),
        g1=params["ln1_g"].astype(jnp.float32),
        be1=params["ln1_b"].astype(jnp.float32),
        w1=params["w1_t"].astype(_BF16),
        b1=params["b1"].astype(jnp.float32),
        w2=params["w2_t"].astype(_BF16),
        b2=params["b2"].astype(jnp.float32),
        g2=params["ln2_g"].astype(jnp.float32),
        be2=params["ln2_b"].astype(jnp.float32),
    )


def _pick_q_tile(S):
    if S <= 256:
        return S
    cand = 256
    while cand >= 8:
        if S % cand == 0:
            return cand
        cand -= 8
    # TODO(synk): pad S to a multiple of 8 to enable seq tiling for ragged lengths.
    return S


def residual_attention_block(x, params, n_head):
    """Whisper ResidualAttentionBlock forward (self-attention path).

    x: (B, S, D) float32.  params: dict of f32 'PyTorch-layout' weights (see _init_params).
    """
    B, S, D = x.shape
    assert D % n_head == 0, "n_state must be divisible by n_head"
    dh = D // n_head
    n_mlp = 4 * D

    kp = _prepare_params(params, n_head)
    q_tile = _pick_q_tile(S)
    nq = S // q_tile

    hbm = pl.BlockSpec(memory_space=pl.ANY)          # big weights stay in HBM, DMA'd manually

    def vec(width):                                  # small (1, width) params, auto-pipelined
        return pl.BlockSpec((1, width), lambda b, q: (0, 0))

    in_specs = [
        pl.BlockSpec((1, S, D), lambda b, q: (b, 0, 0)),        # x, full sequence (K/V source)
        pl.BlockSpec((1, q_tile, D), lambda b, q: (b, q, 0)),   # x, query tile (pipelined)
        hbm, vec(D),                                            # Wq^T (bf16), bq
        hbm,                                                    # Wk^T
        hbm, vec(D),                                            # Wv^T, bv
        hbm, vec(D),                                            # Wo (H, dh, D), bo
        vec(D), vec(D),                                         # ln1 gamma, beta
        hbm, vec(n_mlp),                                        # W1^T, b1
        hbm, vec(D),                                            # W2^T, b2
        vec(D), vec(D),                                         # ln2 gamma, beta
    ]
    out_specs = pl.BlockSpec((1, q_tile, D), lambda b, q: (b, q, 0))

    scratch_shapes = [
        pltpu.VMEM((D, D), _BF16),            # Wq
        pltpu.VMEM((D, D), _BF16),            # Wk
        pltpu.VMEM((D, D), _BF16),            # Wv
        pltpu.VMEM((n_head, dh, D), _BF16),   # Wo (per-head)
        pltpu.VMEM((D, n_mlp), _BF16),        # W1
        pltpu.VMEM((n_mlp, D), _BF16),        # W2
        pltpu.VMEM((n_head, S, dh), _BF16),   # K cache
        pltpu.VMEM((n_head, S, dh), _BF16),   # V cache
        pltpu.SemaphoreType.DMA((6,)),
    ]

    # VMEM limit sized from actual buffer usage (single-buffered weights + activations).
    weight_vmem = (4 * D * D + 2 * D * n_mlp) * 2
    kv_vmem = 2 * n_head * S * dh * 2
    block_vmem = 2 * (S * D * 4) + 4 * (q_tile * D * 4)
    interm_vmem = (3 * n_head * q_tile * S * 4
                   + n_head * q_tile * D * 4
                   + 2 * q_tile * n_mlp * 4)
    vmem_limit = int(min(100 * 2 ** 20,
                         max(16 * 2 ** 20,
                             weight_vmem + kv_vmem + block_vmem + interm_vmem + (4 << 20))))

    kernel = functools.partial(_block_kernel, n_head=n_head)

    return pl.pallas_call(
        kernel,
        out_shape=jax.ShapeDtypeStruct((B, S, D), jnp.float32),
        grid_spec=pltpu.PrefetchScalarGridSpec(
            num_scalar_prefetch=0,
            grid=(B, nq),
            in_specs=in_specs,
            out_specs=out_specs,
            scratch_shapes=scratch_shapes,
        ),
        compiler_params=pltpu.CompilerParams(
            # batch axis parallel (engages v7x's 2nd TensorCore when B>=2); seq axis is
            # "arbitrary" because the K/V scratch cache is reused across query tiles.
            dimension_semantics=("parallel", "arbitrary"),
            vmem_limit_bytes=vmem_limit,
        ),
    )(
        x, x,
        kp["wq"], kp["bq"], kp["wk"], kp["wv"], kp["bv"], kp["wo"], kp["bo"],
        kp["g1"], kp["be1"],
        kp["w1"], kp["b1"], kp["w2"], kp["b2"],
        kp["g2"], kp["be2"],
    )


def _reference(x, p, n_head):
    """Pure-JAX PyTorch-faithful forward, using the same bf16 matmul inputs / f32
    accumulation as the kernel so results are directly comparable."""
    B, S, D = x.shape
    dh = D // n_head
    scale = dh ** -0.25

    def ln(z, g, b):
        mu = jnp.mean(z, -1, keepdims=True)
        var = jnp.mean((z - mu) ** 2, -1, keepdims=True)
        return (z - mu) / jnp.sqrt(var + 1e-5) * g + b

    def mm(a, w):
        return jnp.einsum("...i,ij->...j", a.astype(_BF16), w.astype(_BF16),
                          preferred_element_type=jnp.float32)

    ln1 = ln(x, p["ln1_g"], p["ln1_b"])
    q = mm(ln1, p["wq_t"]) + p["bq"]
    k = mm(ln1, p["wk_t"])
    v = mm(ln1, p["wv_t"]) + p["bv"]
    qh = q.reshape(B, S, n_head, dh).transpose(0, 2, 1, 3) * scale
    kh = k.reshape(B, S, n_head, dh).transpose(0, 2, 3, 1) * scale
    vh = v.reshape(B, S, n_head, dh).transpose(0, 2, 1, 3)
    qk = jnp.einsum("bhqc,bhck->bhqk", qh.astype(_BF16), kh.astype(_BF16),
                    preferred_element_type=jnp.float32)
    w_ = jax.nn.softmax(qk, axis=-1)
    wv = jnp.einsum("bhqk,bhkc->bhqc", w_.astype(_BF16), vh.astype(_BF16),
                    preferred_element_type=jnp.float32)
    wv = wv.transpose(0, 2, 1, 3).reshape(B, S, D)
    attn_out = mm(wv, p["wo_t"]) + p["bo"]
    x1 = x + attn_out
    ln2 = ln(x1, p["ln2_g"], p["ln2_b"])
    h1 = mm(ln2, p["w1_t"]) + p["b1"]
    h1 = 0.5 * h1 * (1.0 + lax.erf(h1 / jnp.sqrt(2.0)))
    return x1 + mm(h1, p["w2_t"]) + p["b2"]


def _init_params(key, n_state, n_head):
    n_mlp = 4 * n_state
    keys = jax.random.split(key, 11)
    s = 0.02

    def w(k, shape):
        return jax.random.normal(k, shape, jnp.float32) * s

    return {
        # Linear weights stored pre-transposed: (in_features, out_features)
        "wq_t": w(keys[0], (n_state, n_state)),
        "bq":   w(keys[1], (1, n_state)),
        "wk_t": w(keys[2], (n_state, n_state)),
        "wv_t": w(keys[3], (n_state, n_state)),
        "bv":   w(keys[4], (1, n_state)),
        "wo_t": w(keys[5], (n_state, n_state)),
        "bo":   w(keys[6], (1, n_state)),
        "ln1_g": jnp.ones((1, n_state), jnp.float32),
        "ln1_b": jnp.zeros((1, n_state), jnp.float32),
        "w1_t": w(keys[7], (n_state, n_mlp)),
        "b1":   w(keys[8], (1, n_mlp)),
        "w2_t": w(keys[9], (n_mlp, n_state)),
        "b2":   w(keys[10], (1, n_state)),
        "ln2_g": jnp.ones((1, n_state), jnp.float32),
        "ln2_b": jnp.zeros((1, n_state), jnp.float32),
    }


if __name__ == "__main__":
    B, S, D, H = 2, 8, 32, 4   # batch, seq, n_state, n_head (head_dim = 8)

    key = jax.random.PRNGKey(0)
    kx, kp = jax.random.split(key)
    x = jax.random.normal(kx, (B, S, D), jnp.float32)
    params = _init_params(kp, D, H)

    out = residual_attention_block(x, params, H)
    out = jax.block_until_ready(out)

    ref = _reference(x, params, H)
    assert out.shape == (B, S, D)
    max_err = float(jnp.max(jnp.abs(out - ref)))
    assert jnp.allclose(out, ref, atol=2e-2, rtol=2e-2), f"mismatch vs reference (max abs err {max_err})"

    print("KERNEL_OK")
</pallas_src>

<mosaic_0001>
module attributes {stable_mosaic.version = 11 : i64} {
  func.func @_block_kernel(%arg0: i32, %arg1: i32, %arg2: memref<1x8x32xf32, #tpu.memory_space<vmem>>, %arg3: memref<1x8x32xf32, #tpu.memory_space<vmem>>, %arg4: memref<32x32xbf16, #tpu.memory_space<any>>, %arg5: memref<1x32xf32, #tpu.memory_space<vmem>>, %arg6: memref<32x32xbf16, #tpu.memory_space<any>>, %arg7: memref<32x32xbf16, #tpu.memory_space<any>>, %arg8: memref<1x32xf32, #tpu.memory_space<vmem>>, %arg9: memref<4x8x32xbf16, #tpu.memory_space<any>>, %arg10: memref<1x32xf32, #tpu.memory_space<vmem>>, %arg11: memref<1x32xf32, #tpu.memory_space<vmem>>, %arg12: memref<1x32xf32, #tpu.memory_space<vmem>>, %arg13: memref<32x128xbf16, #tpu.memory_space<any>>, %arg14: memref<1x128xf32, #tpu.memory_space<vmem>>, %arg15: memref<128x32xbf16, #tpu.memory_space<any>>, %arg16: memref<1x32xf32, #tpu.memory_space<vmem>>, %arg17: memref<1x32xf32, #tpu.memory_space<vmem>>, %arg18: memref<1x32xf32, #tpu.memory_space<vmem>>, %arg19: memref<1x8x32xf32, #tpu.memory_space<vmem>>, %arg20: memref<32x32xbf16, #tpu.memory_space<vmem>>, %arg21: memref<32x32xbf16, #tpu.memory_space<vmem>>, %arg22: memref<32x32xbf16, #tpu.memory_space<vmem>>, %arg23: memref<4x8x32xbf16, #tpu.memory_space<vmem>>, %arg24: memref<32x128xbf16, #tpu.memory_space<vmem>>, %arg25: memref<128x32xbf16, #tpu.memory_space<vmem>>, %arg26: memref<4x8x8xbf16, #tpu.memory_space<vmem>>, %arg27: memref<4x8x8xbf16, #tpu.memory_space<vmem>>, %arg28: memref<6x!tpu.dma_semaphore, #tpu.memory_space<semaphore_mem>>) attributes {dimension_semantics = [#tpu.dimension_semantics<parallel>, #tpu.dimension_semantics<arbitrary>], iteration_bounds = array<i64: 2, 1>, scalar_prefetch = 0 : i64, scratch_operands = 9 : i64, tpu.core_type = #tpu.core_type<tc>, window_params = [{transform_indices = @transform_0, window_bounds = array<i64: 1, 8, 32>}, {transform_indices = @transform_1, window_bounds = array<i64: 1, 8, 32>}, {}, {pipeline_mode = #tpu.pipeline_mode<synchronous>, transform_indices = @transform_3, window_bounds = array<i64: 1, 32>}, {}, {}, {pipeline_mode = #tpu.pipeline_mode<synchronous>, transform_indices = @transform_6, window_bounds = array<i64: 1, 32>}, {}, {pipeline_mode = #tpu.pipeline_mode<synchronous>, transform_indices = @transform_8, window_bounds = array<i64: 1, 32>}, {pipeline_mode = #tpu.pipeline_mode<synchronous>, transform_indices = @transform_9, window_bounds = array<i64: 1, 32>}, {pipeline_mode = #tpu.pipeline_mode<synchronous>, transform_indices = @transform_10, window_bounds = array<i64: 1, 32>}, {}, {pipeline_mode = #tpu.pipeline_mode<synchronous>, transform_indices = @transform_12, window_bounds = array<i64: 1, 128>}, {}, {pipeline_mode = #tpu.pipeline_mode<synchronous>, transform_indices = @transform_14, window_bounds = array<i64: 1, 32>}, {pipeline_mode = #tpu.pipeline_mode<synchronous>, transform_indices = @transform_15, window_bounds = array<i64: 1, 32>}, {pipeline_mode = #tpu.pipeline_mode<synchronous>, transform_indices = @transform_16, window_bounds = array<i64: 1, 32>}, {transform_indices = @transform_17, window_bounds = array<i64: 1, 8, 32>}]} {
    %c0_i32 = arith.constant 0 : i32
    %0 = arith.cmpi eq, %arg1, %c0_i32 : i32
    %1 = arith.extui %0 : i1 to i32
    %c0_i32_0 = arith.constant 0 : i32
    %2 = arith.cmpi ne, %1, %c0_i32_0 : i32
    scf.if %2 {
      %c0_i32_58 = arith.constant 0 : i32
      %116 = tpu.memref_slice %arg28[%c0_i32_58] : memref<6x!tpu.dma_semaphore, #tpu.memory_space<semaphore_mem>> -> memref<1x!tpu.dma_semaphore, #tpu.memory_space<semaphore_mem>>
      %117 = tpu.memref_squeeze %116 : memref<1x!tpu.dma_semaphore, #tpu.memory_space<semaphore_mem>> -> memref<!tpu.dma_semaphore, #tpu.memory_space<semaphore_mem>>
      tpu.enqueue_dma source(%arg4 : memref<32x32xbf16, #tpu.memory_space<any>>) target(%arg20 : memref<32x32xbf16, #tpu.memory_space<vmem>>) target_semaphore(%117 : memref<!tpu.dma_semaphore, #tpu.memory_space<semaphore_mem>>)
      %c1_i32 = arith.constant 1 : i32
      %118 = tpu.memref_slice %arg28[%c1_i32] : memref<6x!tpu.dma_semaphore, #tpu.memory_space<semaphore_mem>> -> memref<1x!tpu.dma_semaphore, #tpu.memory_space<semaphore_mem>>
      %119 = tpu.memref_squeeze %118 : memref<1x!tpu.dma_semaphore, #tpu.memory_space<semaphore_mem>> -> memref<!tpu.dma_semaphore, #tpu.memory_space<semaphore_mem>>
      tpu.enqueue_dma source(%arg6 : memref<32x32xbf16, #tpu.memory_space<any>>) target(%arg21 : memref<32x32xbf16, #tpu.memory_space<vmem>>) target_semaphore(%119 : memref<!tpu.dma_semaphore, #tpu.memory_space<semaphore_mem>>)
      %c2_i32 = arith.constant 2 : i32
      %120 = tpu.memref_slice %arg28[%c2_i32] : memref<6x!tpu.dma_semaphore, #tpu.memory_space<semaphore_mem>> -> memref<1x!tpu.dma_semaphore, #tpu.memory_space<semaphore_mem>>
      %121 = tpu.memref_squeeze %120 : memref<1x!tpu.dma_semaphore, #tpu.memory_space<semaphore_mem>> -> memref<!tpu.dma_semaphore, #tpu.memory_space<semaphore_mem>>
      tpu.enqueue_dma source(%arg7 : memref<32x32xbf16, #tpu.memory_space<any>>) target(%arg22 : memref<32x32xbf16, #tpu.memory_space<vmem>>) target_semaphore(%121 : memref<!tpu.dma_semaphore, #tpu.memory_space<semaphore_mem>>)
      %c3_i32 = arith.constant 3 : i32
      %122 = tpu.memref_slice %arg28[%c3_i32] : memref<6x!tpu.dma_semaphore, #tpu.memory_space<semaphore_mem>> -> memref<1x!tpu.dma_semaphore, #tpu.memory_space<semaphore_mem>>
      %123 = tpu.memref_squeeze %122 : memref<1x!tpu.dma_semaphore, #tpu.memory_space<semaphore_mem>> -> memref<!tpu.dma_semaphore, #tpu.memory_space<semaphore_mem>>
      tpu.enqueue_dma source(%arg9 : memref<4x8x32xbf16, #tpu.memory_space<any>>) target(%arg23 : memref<4x8x32xbf16, #tpu.memory_space<vmem>>) target_semaphore(%123 : memref<!tpu.dma_semaphore, #tpu.memory_space<semaphore_mem>>)
      %c4_i32 = arith.constant 4 : i32
      %124 = tpu.memref_slice %arg28[%c4_i32] : memref<6x!tpu.dma_semaphore, #tpu.memory_space<semaphore_mem>> -> memref<1x!tpu.dma_semaphore, #tpu.memory_space<semaphore_mem>>
      %125 = tpu.memref_squeeze %124 : memref<1x!tpu.dma_semaphore, #tpu.memory_space<semaphore_mem>> -> memref<!tpu.dma_semaphore, #tpu.memory_space<semaphore_mem>>
      tpu.enqueue_dma source(%arg13 : memref<32x128xbf16, #tpu.memory_space<any>>) target(%arg24 : memref<32x128xbf16, #tpu.memory_space<vmem>>) target_semaphore(%125 : memref<!tpu.dma_semaphore, #tpu.memory_space<semaphore_mem>>)
      %c5_i32 = arith.constant 5 : i32
      %126 = tpu.memref_slice %arg28[%c5_i32] : memref<6x!tpu.dma_semaphore, #tpu.memory_space<semaphore_mem>> -> memref<1x!tpu.dma_semaphore, #tpu.memory_space<semaphore_mem>>
      %127 = tpu.memref_squeeze %126 : memref<1x!tpu.dma_semaphore, #tpu.memory_space<semaphore_mem>> -> memref<!tpu.dma_semaphore, #tpu.memory_space<semaphore_mem>>
      tpu.enqueue_dma source(%arg15 : memref<128x32xbf16, #tpu.memory_space<any>>) target(%arg25 : memref<128x32xbf16, #tpu.memory_space<vmem>>) target_semaphore(%127 : memref<!tpu.dma_semaphore, #tpu.memory_space<semaphore_mem>>)
      %c0_i32_59 = arith.constant 0 : i32
      %128 = tpu.memref_slice %arg28[%c0_i32_59] : memref<6x!tpu.dma_semaphore, #tpu.memory_space<semaphore_mem>> -> memref<1x!tpu.dma_semaphore, #tpu.memory_space<semaphore_mem>>
      %129 = tpu.memref_squeeze %128 : memref<1x!tpu.dma_semaphore, #tpu.memory_space<semaphore_mem>> -> memref<!tpu.dma_semaphore, #tpu.memory_space<semaphore_mem>>
      tpu.wait_dma2 semaphore(%129 : memref<!tpu.dma_semaphore, #tpu.memory_space<semaphore_mem>>) src(%arg4 : memref<32x32xbf16, #tpu.memory_space<any>>) dst(%arg20 : memref<32x32xbf16, #tpu.memory_space<vmem>>)
      %c1_i32_60 = arith.constant 1 : i32
      %130 = tpu.memref_slice %arg28[%c1_i32_60] : memref<6x!tpu.dma_semaphore, #tpu.memory_space<semaphore_mem>> -> memref<1x!tpu.dma_semaphore, #tpu.memory_space<semaphore_mem>>
      %131 = tpu.memref_squeeze %130 : memref<1x!tpu.dma_semaphore, #tpu.memory_space<semaphore_mem>> -> memref<!tpu.dma_semaphore, #tpu.memory_space<semaphore_mem>>
      tpu.wait_dma2 semaphore(%131 : memref<!tpu.dma_semaphore, #tpu.memory_space<semaphore_mem>>) src(%arg6 : memref<32x32xbf16, #tpu.memory_space<any>>) dst(%arg21 : memref<32x32xbf16, #tpu.memory_space<vmem>>)
      %c2_i32_61 = arith.constant 2 : i32
      %132 = tpu.memref_slice %arg28[%c2_i32_61] : memref<6x!tpu.dma_semaphore, #tpu.memory_space<semaphore_mem>> -> memref<1x!tpu.dma_semaphore, #tpu.memory_space<semaphore_mem>>
      %133 = tpu.memref_squeeze %132 : memref<1x!tpu.dma_semaphore, #tpu.memory_space<semaphore_mem>> -> memref<!tpu.dma_semaphore, #tpu.memory_space<semaphore_mem>>
      tpu.wait_dma2 semaphore(%133 : memref<!tpu.dma_semaphore, #tpu.memory_space<semaphore_mem>>) src(%arg7 : memref<32x32xbf16, #tpu.memory_space<any>>) dst(%arg22 : memref<32x32xbf16, #tpu.memory_space<vmem>>)
      %c3_i32_62 = arith.constant 3 : i32
      %134 = tpu.memref_slice %arg28[%c3_i32_62] : memref<6x!tpu.dma_semaphore, #tpu.memory_space<semaphore_mem>> -> memref<1x!tpu.dma_semaphore, #tpu.memory_space<semaphore_mem>>
      %135 = tpu.memref_squeeze %134 : memref<1x!tpu.dma_semaphore, #tpu.memory_space<semaphore_mem>> -> memref<!tpu.dma_semaphore, #tpu.memory_space<semaphore_mem>>
      tpu.wait_dma2 semaphore(%135 : memref<!tpu.dma_semaphore, #tpu.memory_space<semaphore_mem>>) src(%arg9 : memref<4x8x32xbf16, #tpu.memory_space<any>>) dst(%arg23 : memref<4x8x32xbf16, #tpu.memory_space<vmem>>)
      %c4_i32_63 = arith.constant 4 : i32
      %136 = tpu.memref_slice %arg28[%c4_i32_63] : memref<6x!tpu.dma_semaphore, #tpu.memory_space<semaphore_mem>> -> memref<1x!tpu.dma_semaphore, #tpu.memory_space<semaphore_mem>>
      %137 = tpu.memref_squeeze %136 : memref<1x!tpu.dma_semaphore, #tpu.memory_space<semaphore_mem>> -> memref<!tpu.dma_semaphore, #tpu.memory_space<semaphore_mem>>
      tpu.wait_dma2 semaphore(%137 : memref<!tpu.dma_semaphore, #tpu.memory_space<semaphore_mem>>) src(%arg13 : memref<32x128xbf16, #tpu.memory_space<any>>) dst(%arg24 : memref<32x128xbf16, #tpu.memory_space<vmem>>)
      %c5_i32_64 = arith.constant 5 : i32
      %138 = tpu.memref_slice %arg28[%c5_i32_64] : memref<6x!tpu.dma_semaphore, #tpu.memory_space<semaphore_mem>> -> memref<1x!tpu.dma_semaphore, #tpu.memory_space<semaphore_mem>>
      %139 = tpu.memref_squeeze %138 : memref<1x!tpu.dma_semaphore, #tpu.memory_space<semaphore_mem>> -> memref<!tpu.dma_semaphore, #tpu.memory_space<semaphore_mem>>
      tpu.wait_dma2 semaphore(%139 : memref<!tpu.dma_semaphore, #tpu.memory_space<semaphore_mem>>) src(%arg15 : memref<128x32xbf16, #tpu.memory_space<any>>) dst(%arg25 : memref<128x32xbf16, #tpu.memory_space<vmem>>)
      %c0_65 = arith.constant 0 : index
      %c0_66 = arith.constant 0 : index
      %c0_67 = arith.constant 0 : index
      %140 = vector.load %arg2[%c0_65, %c0_66, %c0_67] : memref<1x8x32xf32, #tpu.memory_space<vmem>>, vector<1x8x32xf32>
      %141 = vector.shape_cast %140 : vector<1x8x32xf32> to vector<8x32xf32>
      %c0_68 = arith.constant 0 : index
      %c0_69 = arith.constant 0 : index
      %142 = vector.load %arg11[%c0_68, %c0_69] : memref<1x32xf32, #tpu.memory_space<vmem>>, vector<1x32xf32>
      %c0_70 = arith.constant 0 : index
      %c0_71 = arith.constant 0 : index
      %143 = vector.load %arg12[%c0_70, %c0_71] : memref<1x32xf32, #tpu.memory_space<vmem>>, vector<1x32xf32>
      %cst_72 = arith.constant dense<0.000000e+00> : vector<8xf32>
      %144 = vector.multi_reduction <add>, %141, %cst_72 [1] : vector<8x32xf32> to vector<8xf32>
      %145 = vector.shape_cast %144 : vector<8xf32> to vector<8x1xf32>
      %cst_73 = arith.constant 3.200000e+01 : f32
      %146 = vector.broadcast %cst_73 : f32 to vector<8x1xf32>
      %147 = arith.divf %145, %146 : vector<8x1xf32>
      %148 = vector.broadcast %147 : vector<8x1xf32> to vector<8x32xf32>
      %149 = arith.subf %141, %148 : vector<8x32xf32>
      %150 = arith.mulf %149, %149 : vector<8x32xf32>
      %cst_74 = arith.constant dense<0.000000e+00> : vector<8xf32>
      %151 = vector.multi_reduction <add>, %150, %cst_74 [1] : vector<8x32xf32> to vector<8xf32>
      %152 = vector.shape_cast %151 : vector<8xf32> to vector<8x1xf32>
      %cst_75 = arith.constant 3.200000e+01 : f32
      %153 = vector.broadcast %cst_75 : f32 to vector<8x1xf32>
      %154 = arith.divf %152, %153 : vector<8x1xf32>
      %155 = vector.broadcast %147 : vector<8x1xf32> to vector<8x32xf32>
      %156 = arith.subf %141, %155 : vector<8x32xf32>
      %cst_76 = arith.constant 9.99999974E-6 : f32
      %157 = vector.broadcast %cst_76 : f32 to vector<8x1xf32>
      %158 = arith.addf %154, %157 : vector<8x1xf32>
      %159 = math.rsqrt %158 : vector<8x1xf32>
      %160 = vector.broadcast %159 : vector<8x1xf32> to vector<8x32xf32>
      %161 = arith.mulf %156, %160 : vector<8x32xf32>
      %162 = vector.broadcast %142 : vector<1x32xf32> to vector<8x32xf32>
      %163 = arith.mulf %161, %162 : vector<8x32xf32>
      %164 = vector.broadcast %143 : vector<1x32xf32> to vector<8x32xf32>
      %165 = arith.addf %163, %164 : vector<8x32xf32>
      %166 = arith.truncf %165 : vector<8x32xf32> to vector<8x32xbf16>
      %c0_77 = arith.constant 0 : index
      %c0_78 = arith.constant 0 : index
      %167 = vector.load %arg21[%c0_77, %c0_78] : memref<32x32xbf16, #tpu.memory_space<vmem>>, vector<32x32xbf16>
      %cst_79 = arith.constant dense<0.000000e+00> : vector<8x32xf32>
      %168 = tpu.matmul %166, %167, %cst_79 {dimension_numbers = #tpu.dot_dimension_numbers<[1], [0], [0], [1], [0, 0, 1, 1], [], []>} : vector<8x32xbf16>, vector<32x32xbf16>, vector<8x32xf32> -> vector<8x32xf32>
      %c0_80 = arith.constant 0 : index
      %c0_81 = arith.constant 0 : index
      %169 = vector.load %arg22[%c0_80, %c0_81] : memref<32x32xbf16, #tpu.memory_space<vmem>>, vector<32x32xbf16>
      %cst_82 = arith.constant dense<0.000000e+00> : vector<8x32xf32>
      %170 = tpu.matmul %166, %169, %cst_82 {dimension_numbers = #tpu.dot_dimension_numbers<[1], [0], [0], [1], [0, 0, 1, 1], [], []>} : vector<8x32xbf16>, vector<32x32xbf16>, vector<8x32xf32> -> vector<8x32xf32>
      %c0_83 = arith.constant 0 : index
      %c0_84 = arith.constant 0 : index
      %171 = vector.load %arg8[%c0_83, %c0_84] : memref<1x32xf32, #tpu.memory_space<vmem>>, vector<1x32xf32>
      %172 = vector.broadcast %171 : vector<1x32xf32> to vector<8x32xf32>
      %173 = arith.addf %170, %172 : vector<8x32xf32>
      %174 = vector.extract_strided_slice %168 {offsets = [0, 0], sizes = [8, 8], strides = [1, 1]} : vector<8x32xf32> to vector<8x8xf32>
      %175 = arith.truncf %174 : vector<8x8xf32> to vector<8x8xbf16>
      %c0_85 = arith.constant 0 : index
      %c0_86 = arith.constant 0 : index
      %c0_87 = arith.constant 0 : index
      %176 = vector.load %arg26[%c0_85, %c0_86, %c0_87] : memref<4x8x8xbf16, #tpu.memory_space<vmem>>, vector<1x8x8xbf16>
      %177 = vector.shape_cast %176 : vector<1x8x8xbf16> to vector<8x8xbf16>
      %178 = vector.shape_cast %175 : vector<8x8xbf16> to vector<1x8x8xbf16>
      tpu.vector_store %arg26[%c0_85, %c0_86, %c0_87], %178 {strides = array<i32>} : memref<4x8x8xbf16, #tpu.memory_space<vmem>>, vector<1x8x8xbf16>,
      %179 = vector.extract_strided_slice %173 {offsets = [0, 0], sizes = [8, 8], strides = [1, 1]} : vector<8x32xf32> to vector<8x8xf32>
      %180 = arith.truncf %179 : vector<8x8xf32> to vector<8x8xbf16>
      %c0_88 = arith.constant 0 : index
      %c0_89 = arith.constant 0 : index
      %c0_90 = arith.constant 0 : index
      %181 = vector.load %arg27[%c0_88, %c0_89, %c0_90] : memref<4x8x8xbf16, #tpu.memory_space<vmem>>, vector<1x8x8xbf16>
      %182 = vector.shape_cast %181 : vector<1x8x8xbf16> to vector<8x8xbf16>
      %183 = vector.shape_cast %180 : vector<8x8xbf16> to vector<1x8x8xbf16>
      tpu.vector_store %arg27[%c0_88, %c0_89, %c0_90], %183 {strides = array<i32>} : memref<4x8x8xbf16, #tpu.memory_space<vmem>>, vector<1x8x8xbf16>,
      %184 = vector.extract_strided_slice %168 {offsets = [0, 8], sizes = [8, 8], strides = [1, 1]} : vector<8x32xf32> to vector<8x8xf32>
      %185 = arith.truncf %184 : vector<8x8xf32> to vector<8x8xbf16>
      %c1 = arith.constant 1 : index
      %c0_91 = arith.constant 0 : index
      %c0_92 = arith.constant 0 : index
      %186 = vector.load %arg26[%c1, %c0_91, %c0_92] : memref<4x8x8xbf16, #tpu.memory_space<vmem>>, vector<1x8x8xbf16>
      %187 = vector.shape_cast %186 : vector<1x8x8xbf16> to vector<8x8xbf16>
      %188 = vector.shape_cast %185 : vector<8x8xbf16> to vector<1x8x8xbf16>
      tpu.vector_store %arg26[%c1, %c0_91, %c0_92], %188 {strides = array<i32>} : memref<4x8x8xbf16, #tpu.memory_space<vmem>>, vector<1x8x8xbf16>,
      %189 = vector.extract_strided_slice %173 {offsets = [0, 8], sizes = [8, 8], strides = [1, 1]} : vector<8x32xf32> to vector<8x8xf32>
      %190 = arith.truncf %189 : vector<8x8xf32> to vector<8x8xbf16>
      %c1_93 = arith.constant 1 : index
      %c0_94 = arith.constant 0 : index
      %c0_95 = arith.constant 0 : index
      %191 = vector.load %arg27[%c1_93, %c0_94, %c0_95] : memref<4x8x8xbf16, #tpu.memory_space<vmem>>, vector<1x8x8xbf16>
      %192 = vector.shape_cast %191 : vector<1x8x8xbf16> to vector<8x8xbf16>
      %193 = vector.shape_cast %190 : vector<8x8xbf16> to vector<1x8x8xbf16>
      tpu.vector_store %arg27[%c1_93, %c0_94, %c0_95], %193 {strides = array<i32>} : memref<4x8x8xbf16, #tpu.memory_space<vmem>>, vector<1x8x8xbf16>,
      %194 = vector.extract_strided_slice %168 {offsets = [0, 16], sizes = [8, 8], strides = [1, 1]} : vector<8x32xf32> to vector<8x8xf32>
      %195 = arith.truncf %194 : vector<8x8xf32> to vector<8x8xbf16>
      %c2 = arith.constant 2 : index
      %c0_96 = arith.constant 0 : index
      %c0_97 = arith.constant 0 : index
      %196 = vector.load %arg26[%c2, %c0_96, %c0_97] : memref<4x8x8xbf16, #tpu.memory_space<vmem>>, vector<1x8x8xbf16>
      %197 = vector.shape_cast %196 : vector<1x8x8xbf16> to vector<8x8xbf16>
      %198 = vector.shape_cast %195 : vector<8x8xbf16> to vector<1x8x8xbf16>
      tpu.vector_store %arg26[%c2, %c0_96, %c0_97], %198 {strides = array<i32>} : memref<4x8x8xbf16, #tpu.memory_space<vmem>>, vector<1x8x8xbf16>,
      %199 = vector.extract_strided_slice %173 {offsets = [0, 16], sizes = [8, 8], strides = [1, 1]} : vector<8x32xf32> to vector<8x8xf32>
      %200 = arith.truncf %199 : vector<8x8xf32> to vector<8x8xbf16>
      %c2_98 = arith.constant 2 : index
      %c0_99 = arith.constant 0 : index
      %c0_100 = arith.constant 0 : index
      %201 = vector.load %arg27[%c2_98, %c0_99, %c0_100] : memref<4x8x8xbf16, #tpu.memory_space<vmem>>, vector<1x8x8xbf16>
      %202 = vector.shape_cast %201 : vector<1x8x8xbf16> to vector<8x8xbf16>
      %203 = vector.shape_cast %200 : vector<8x8xbf16> to vector<1x8x8xbf16>
      tpu.vector_store %arg27[%c2_98, %c0_99, %c0_100], %203 {strides = array<i32>} : memref<4x8x8xbf16, #tpu.memory_space<vmem>>, vector<1x8x8xbf16>,
      %204 = vector.extract_strided_slice %168 {offsets = [0, 24], sizes = [8, 8], strides = [1, 1]} : vector<8x32xf32> to vector<8x8xf32>
      %205 = arith.truncf %204 : vector<8x8xf32> to vector<8x8xbf16>
      %c3 = arith.constant 3 : index
      %c0_101 = arith.constant 0 : index
      %c0_102 = arith.constant 0 : index
      %206 = vector.load %arg26[%c3, %c0_101, %c0_102] : memref<4x8x8xbf16, #tpu.memory_space<vmem>>, vector<1x8x8xbf16>
      %207 = vector.shape_cast %206 : vector<1x8x8xbf16> to vector<8x8xbf16>
      %208 = vector.shape_cast %205 : vector<8x8xbf16> to vector<1x8x8xbf16>
      tpu.vector_store %arg26[%c3, %c0_101, %c0_102], %208 {strides = array<i32>} : memref<4x8x8xbf16, #tpu.memory_space<vmem>>, vector<1x8x8xbf16>,
      %209 = vector.extract_strided_slice %173 {offsets = [0, 24], sizes = [8, 8], strides = [1, 1]} : vector<8x32xf32> to vector<8x8xf32>
      %210 = arith.truncf %209 : vector<8x8xf32> to vector<8x8xbf16>
      %c3_103 = arith.constant 3 : index
      %c0_104 = arith.constant 0 : index
      %c0_105 = arith.constant 0 : index
      %211 = vector.load %arg27[%c3_103, %c0_104, %c0_105] : memref<4x8x8xbf16, #tpu.memory_space<vmem>>, vector<1x8x8xbf16>
      %212 = vector.shape_cast %211 : vector<1x8x8xbf16> to vector<8x8xbf16>
      %213 = vector.shape_cast %210 : vector<8x8xbf16> to vector<1x8x8xbf16>
      tpu.vector_store %arg27[%c3_103, %c0_104, %c0_105], %213 {strides = array<i32>} : memref<4x8x8xbf16, #tpu.memory_space<vmem>>, vector<1x8x8xbf16>,
    } else {
    }
    %c0 = arith.constant 0 : index
    %c0_1 = arith.constant 0 : index
    %c0_2 = arith.constant 0 : index
    %3 = vector.load %arg3[%c0, %c0_1, %c0_2] : memref<1x8x32xf32, #tpu.memory_space<vmem>>, vector<1x8x32xf32>
    %4 = vector.shape_cast %3 : vector<1x8x32xf32> to vector<8x32xf32>
    %c0_3 = arith.constant 0 : index
    %c0_4 = arith.constant 0 : index
    %5 = vector.load %arg11[%c0_3, %c0_4] : memref<1x32xf32, #tpu.memory_space<vmem>>, vector<1x32xf32>
    %c0_5 = arith.constant 0 : index
    %c0_6 = arith.constant 0 : index
    %6 = vector.load %arg12[%c0_5, %c0_6] : memref<1x32xf32, #tpu.memory_space<vmem>>, vector<1x32xf32>
    %cst = arith.constant dense<0.000000e+00> : vector<8xf32>
    %7 = vector.multi_reduction <add>, %4, %cst [1] : vector<8x32xf32> to vector<8xf32>
    %8 = vector.shape_cast %7 : vector<8xf32> to vector<8x1xf32>
    %cst_7 = arith.constant 3.200000e+01 : f32
    %9 = vector.broadcast %cst_7 : f32 to vector<8x1xf32>
    %10 = arith.divf %8, %9 : vector<8x1xf32>
    %11 = vector.broadcast %10 : vector<8x1xf32> to vector<8x32xf32>
    %12 = arith.subf %4, %11 : vector<8x32xf32>
    %13 = arith.mulf %12, %12 : vector<8x32xf32>
    %cst_8 = arith.constant dense<0.000000e+00> : vector<8xf32>
    %14 = vector.multi_reduction <add>, %13, %cst_8 [1] : vector<8x32xf32> to vector<8xf32>
    %15 = vector.shape_cast %14 : vector<8xf32> to vector<8x1xf32>
    %cst_9 = arith.constant 3.200000e+01 : f32
    %16 = vector.broadcast %cst_9 : f32 to vector<8x1xf32>
    %17 = arith.divf %15, %16 : vector<8x1xf32>
    %18 = vector.broadcast %10 : vector<8x1xf32> to vector<8x32xf32>
    %19 = arith.subf %4, %18 : vector<8x32xf32>
    %cst_10 = arith.constant 9.99999974E-6 : f32
    %20 = vector.broadcast %cst_10 : f32 to vector<8x1xf32>
    %21 = arith.addf %17, %20 : vector<8x1xf32>
    %22 = math.rsqrt %21 : vector<8x1xf32>
    %23 = vector.broadcast %22 : vector<8x1xf32> to vector<8x32xf32>
    %24 = arith.mulf %19, %23 : vector<8x32xf32>
    %25 = vector.broadcast %5 : vector<1x32xf32> to vector<8x32xf32>
    %26 = arith.mulf %24, %25 : vector<8x32xf32>
    %27 = vector.broadcast %6 : vector<1x32xf32> to vector<8x32xf32>
    %28 = arith.addf %26, %27 : vector<8x32xf32>
    %29 = arith.truncf %28 : vector<8x32xf32> to vector<8x32xbf16>
    %c0_11 = arith.constant 0 : index
    %c0_12 = arith.constant 0 : index
    %30 = vector.load %arg20[%c0_11, %c0_12] : memref<32x32xbf16, #tpu.memory_space<vmem>>, vector<32x32xbf16>
    %cst_13 = arith.constant dense<0.000000e+00> : vector<8x32xf32>
    %31 = tpu.matmul %29, %30, %cst_13 {dimension_numbers = #tpu.dot_dimension_numbers<[1], [0], [0], [1], [0, 0, 1, 1], [], []>} : vector<8x32xbf16>, vector<32x32xbf16>, vector<8x32xf32> -> vector<8x32xf32>
    %c0_14 = arith.constant 0 : index
    %c0_15 = arith.constant 0 : index
    %32 = vector.load %arg5[%c0_14, %c0_15] : memref<1x32xf32, #tpu.memory_space<vmem>>, vector<1x32xf32>
    %33 = vector.broadcast %32 : vector<1x32xf32> to vector<8x32xf32>
    %34 = arith.addf %31, %33 : vector<8x32xf32>
    %35 = vector.extract_strided_slice %34 {offsets = [0, 0], sizes = [8, 8], strides = [1, 1]} : vector<8x32xf32> to vector<8x8xf32>
    %36 = vector.extract_strided_slice %34 {offsets = [0, 8], sizes = [8, 8], strides = [1, 1]} : vector<8x32xf32> to vector<8x8xf32>
    %37 = vector.extract_strided_slice %34 {offsets = [0, 16], sizes = [8, 8], strides = [1, 1]} : vector<8x32xf32> to vector<8x8xf32>
    %38 = vector.extract_strided_slice %34 {offsets = [0, 24], sizes = [8, 8], strides = [1, 1]} : vector<8x32xf32> to vector<8x8xf32>
    %39 = vector.shape_cast %35 : vector<8x8xf32> to vector<1x8x8xf32>
    %40 = vector.shape_cast %36 : vector<8x8xf32> to vector<1x8x8xf32>
    %41 = vector.shape_cast %37 : vector<8x8xf32> to vector<1x8x8xf32>
    %42 = vector.shape_cast %38 : vector<8x8xf32> to vector<1x8x8xf32>
    %43 = tpu.concatenate %39, %40, %41, %42 in 0 : vector<1x8x8xf32>, vector<1x8x8xf32>, vector<1x8x8xf32>, vector<1x8x8xf32> -> vector<4x8x8xf32>
    %44 = arith.truncf %43 : vector<4x8x8xf32> to vector<4x8x8xbf16>
    %c0_16 = arith.constant 0 : index
    %c0_17 = arith.constant 0 : index
    %c0_18 = arith.constant 0 : index
    %45 = vector.load %arg26[%c0_16, %c0_17, %c0_18] : memref<4x8x8xbf16, #tpu.memory_space<vmem>>, vector<4x8x8xbf16>
    "tpu.trace_start"() <{level = 10 : i32, message = "hqc,hkc->hqk"}> : () -> ()
    %cst_19 = arith.constant dense<0.000000e+00> : vector<4x8x8xf32>
    %46 = tpu.matmul %44, %45, %cst_19 {dimension_numbers = #tpu.dot_dimension_numbers<[2], [2], [1], [1], [0, 0, 0, 1, 1, 1], [0], [0]>} : vector<4x8x8xbf16>, vector<4x8x8xbf16>, vector<4x8x8xf32> -> vector<4x8x8xf32>
    "tpu.trace_stop"() : () -> ()
    %cst_20 = arith.constant dense<0xFF800000> : vector<4x8xf32>
    %47 = vector.multi_reduction <maximumf>, %46, %cst_20 [2] : vector<4x8x8xf32> to vector<4x8xf32>
    %48 = vector.shape_cast %47 : vector<4x8xf32> to vector<4x8x1xf32>
    %49 = vector.broadcast %48 : vector<4x8x1xf32> to vector<4x8x8xf32>
    %50 = arith.subf %46, %49 : vector<4x8x8xf32>
    %51 = math.exp %50 : vector<4x8x8xf32>
    %cst_21 = arith.constant dense<0.000000e+00> : vector<4x8xf32>
    %52 = vector.multi_reduction <add>, %51, %cst_21 [2] : vector<4x8x8xf32> to vector<4x8xf32>
    %53 = vector.shape_cast %52 : vector<4x8xf32> to vector<4x8x1xf32>
    %54 = tpu.reciprocal %53 {approx = true} : vector<4x8x1xf32> -> vector<4x8x1xf32>
    %55 = vector.broadcast %54 : vector<4x8x1xf32> to vector<4x8x8xf32>
    %56 = arith.mulf %51, %55 : vector<4x8x8xf32>
    %57 = arith.truncf %56 : vector<4x8x8xf32> to vector<4x8x8xbf16>
    %c0_22 = arith.constant 0 : index
    %c0_23 = arith.constant 0 : index
    %c0_24 = arith.constant 0 : index
    %58 = vector.load %arg27[%c0_22, %c0_23, %c0_24] : memref<4x8x8xbf16, #tpu.memory_space<vmem>>, vector<4x8x8xbf16>
    "tpu.trace_start"() <{level = 10 : i32, message = "hqk,hkc->hqc"}> : () -> ()
    %cst_25 = arith.constant dense<0.000000e+00> : vector<4x8x8xf32>
    %59 = tpu.matmul %57, %58, %cst_25 {dimension_numbers = #tpu.dot_dimension_numbers<[2], [1], [1], [2], [0, 0, 0, 1, 1, 2], [0], [0]>} : vector<4x8x8xbf16>, vector<4x8x8xbf16>, vector<4x8x8xf32> -> vector<4x8x8xf32>
    "tpu.trace_stop"() : () -> ()
    %60 = arith.truncf %59 : vector<4x8x8xf32> to vector<4x8x8xbf16>
    %c0_26 = arith.constant 0 : index
    %c0_27 = arith.constant 0 : index
    %c0_28 = arith.constant 0 : index
    %61 = vector.load %arg23[%c0_26, %c0_27, %c0_28] : memref<4x8x32xbf16, #tpu.memory_space<vmem>>, vector<4x8x32xbf16>
    "tpu.trace_start"() <{level = 10 : i32, message = "hqc,hcd->hqd"}> : () -> ()
    %cst_29 = arith.constant dense<0.000000e+00> : vector<4x8x32xf32>
    %62 = tpu.matmul %60, %61, %cst_29 {dimension_numbers = #tpu.dot_dimension_numbers<[2], [1], [1], [2], [0, 0, 0, 1, 1, 2], [0], [0]>} : vector<4x8x8xbf16>, vector<4x8x32xbf16>, vector<4x8x32xf32> -> vector<4x8x32xf32>
    "tpu.trace_stop"() : () -> ()
    %cst_30 = arith.constant dense<0.000000e+00> : vector<8x32xf32>
    %63 = vector.multi_reduction <add>, %62, %cst_30 [0] : vector<4x8x32xf32> to vector<8x32xf32>
    %c0_31 = arith.constant 0 : index
    %c0_32 = arith.constant 0 : index
    %64 = vector.load %arg10[%c0_31, %c0_32] : memref<1x32xf32, #tpu.memory_space<vmem>>, vector<1x32xf32>
    %65 = vector.broadcast %64 : vector<1x32xf32> to vector<8x32xf32>
    %66 = arith.addf %63, %65 : vector<8x32xf32>
    %67 = arith.addf %4, %66 : vector<8x32xf32>
    %c0_33 = arith.constant 0 : index
    %c0_34 = arith.constant 0 : index
    %68 = vector.load %arg17[%c0_33, %c0_34] : memref<1x32xf32, #tpu.memory_space<vmem>>, vector<1x32xf32>
    %c0_35 = arith.constant 0 : index
    %c0_36 = arith.constant 0 : index
    %69 = vector.load %arg18[%c0_35, %c0_36] : memref<1x32xf32, #tpu.memory_space<vmem>>, vector<1x32xf32>
    %cst_37 = arith.constant dense<0.000000e+00> : vector<8xf32>
    %70 = vector.multi_reduction <add>, %67, %cst_37 [1] : vector<8x32xf32> to vector<8xf32>
    %71 = vector.shape_cast %70 : vector<8xf32> to vector<8x1xf32>
    %cst_38 = arith.constant 3.200000e+01 : f32
    %72 = vector.broadcast %cst_38 : f32 to vector<8x1xf32>
    %73 = arith.divf %71, %72 : vector<8x1xf32>
    %74 = vector.broadcast %73 : vector<8x1xf32> to vector<8x32xf32>
    %75 = arith.subf %67, %74 : vector<8x32xf32>
    %76 = arith.mulf %75, %75 : vector<8x32xf32>
    %cst_39 = arith.constant dense<0.000000e+00> : vector<8xf32>
    %77 = vector.multi_reduction <add>, %76, %cst_39 [1] : vector<8x32xf32> to vector<8xf32>
    %78 = vector.shape_cast %77 : vector<8xf32> to vector<8x1xf32>
    %cst_40 = arith.constant 3.200000e+01 : f32
    %79 = vector.broadcast %cst_40 : f32 to vector<8x1xf32>
    %80 = arith.divf %78, %79 : vector<8x1xf32>
    %81 = vector.broadcast %73 : vector<8x1xf32> to vector<8x32xf32>
    %82 = arith.subf %67, %81 : vector<8x32xf32>
    %cst_41 = arith.constant 9.99999974E-6 : f32
    %83 = vector.broadcast %cst_41 : f32 to vector<8x1xf32>
    %84 = arith.addf %80, %83 : vector<8x1xf32>
    %85 = math.rsqrt %84 : vector<8x1xf32>
    %86 = vector.broadcast %85 : vector<8x1xf32> to vector<8x32xf32>
    %87 = arith.mulf %82, %86 : vector<8x32xf32>
    %88 = vector.broadcast %68 : vector<1x32xf32> to vector<8x32xf32>
    %89 = arith.mulf %87, %88 : vector<8x32xf32>
    %90 = vector.broadcast %69 : vector<1x32xf32> to vector<8x32xf32>
    %91 = arith.addf %89, %90 : vector<8x32xf32>
    %92 = arith.truncf %91 : vector<8x32xf32> to vector<8x32xbf16>
    %c0_42 = arith.constant 0 : index
    %c0_43 = arith.constant 0 : index
    %93 = vector.load %arg24[%c0_42, %c0_43] : memref<32x128xbf16, #tpu.memory_space<vmem>>, vector<32x128xbf16>
    %cst_44 = arith.constant dense<0.000000e+00> : vector<8x128xf32>
    %94 = tpu.matmul %92, %93, %cst_44 {dimension_numbers = #tpu.dot_dimension_numbers<[1], [0], [0], [1], [0, 0, 1, 1], [], []>} : vector<8x32xbf16>, vector<32x128xbf16>, vector<8x128xf32> -> vector<8x128xf32>
    %c0_45 = arith.constant 0 : index
    %c0_46 = arith.constant 0 : index
    %95 = vector.load %arg14[%c0_45, %c0_46] : memref<1x128xf32, #tpu.memory_space<vmem>>, vector<1x128xf32>
    %96 = vector.broadcast %95 : vector<1x128xf32> to vector<8x128xf32>
    %97 = arith.addf %94, %96 : vector<8x128xf32>
    %cst_47 = arith.constant 5.000000e-01 : f32
    %98 = vector.broadcast %cst_47 : f32 to vector<8x128xf32>
    %99 = arith.mulf %98, %97 : vector<8x128xf32>
    %cst_48 = arith.constant 0.707106769 : f32
    %100 = vector.broadcast %cst_48 : f32 to vector<8x128xf32>
    %101 = arith.mulf %97, %100 : vector<8x128xf32>
    %102 = math.erf %101 : vector<8x128xf32>
    %cst_49 = arith.constant 1.000000e+00 : f32
    %103 = vector.broadcast %cst_49 : f32 to vector<8x128xf32>
    %104 = arith.addf %103, %102 : vector<8x128xf32>
    %105 = arith.mulf %99, %104 : vector<8x128xf32>
    %106 = arith.truncf %105 : vector<8x128xf32> to vector<8x128xbf16>
    %c0_50 = arith.constant 0 : index
    %c0_51 = arith.constant 0 : index
    %107 = vector.load %arg25[%c0_50, %c0_51] : memref<128x32xbf16, #tpu.memory_space<vmem>>, vector<128x32xbf16>
    %cst_52 = arith.constant dense<0.000000e+00> : vector<8x32xf32>
    %108 = tpu.matmul %106, %107, %cst_52 {dimension_numbers = #tpu.dot_dimension_numbers<[1], [0], [0], [1], [0, 0, 1, 1], [], []>} : vector<8x128xbf16>, vector<128x32xbf16>, vector<8x32xf32> -> vector<8x32xf32>
    %c0_53 = arith.constant 0 : index
    %c0_54 = arith.constant 0 : index
    %109 = vector.load %arg16[%c0_53, %c0_54] : memref<1x32xf32, #tpu.memory_space<vmem>>, vector<1x32xf32>
    %110 = vector.broadcast %109 : vector<1x32xf32> to vector<8x32xf32>
    %111 = arith.addf %108, %110 : vector<8x32xf32>
    %112 = arith.addf %67, %111 : vector<8x32xf32>
    %c0_55 = arith.constant 0 : index
    %c0_56 = arith.constant 0 : index
    %c0_57 = arith.constant 0 : index
    %113 = vector.load %arg19[%c0_55, %c0_56, %c0_57] : memref<1x8x32xf32, #tpu.memory_space<vmem>>, vector<1x8x32xf32>
    %114 = vector.shape_cast %113 : vector<1x8x32xf32> to vector<8x32xf32>
    %115 = vector.shape_cast %112 : vector<8x32xf32> to vector<1x8x32xf32>
    tpu.vector_store %arg19[%c0_55, %c0_56, %c0_57], %115 {strides = array<i32>} : memref<1x8x32xf32, #tpu.memory_space<vmem>>, vector<1x8x32xf32>,
    return
  }
  func.func @transform_0(%arg0: i32, %arg1: i32) -> (i32, i32, i32) {
    %c0_i32 = arith.constant 0 : i32
    %c0_i32_0 = arith.constant 0 : i32
    %c0_i32_1 = arith.constant 0 : i32
    return %arg0, %c0_i32, %c0_i32_0 : i32, i32, i32
  }
  func.func @transform_1(%arg0: i32, %arg1: i32) -> (i32, i32, i32) {
    %c0_i32 = arith.constant 0 : i32
    %c0_i32_0 = arith.constant 0 : i32
    return %arg0, %arg1, %c0_i32 : i32, i32, i32
  }
  func.func @transform_3(%arg0: i32, %arg1: i32) -> (i32, i32) {
    %c0_i32 = arith.constant 0 : i32
    %c0_i32_0 = arith.constant 0 : i32
    %c0_i32_1 = arith.constant 0 : i32
    return %c0_i32, %c0_i32_0 : i32, i32
  }
  func.func @transform_6(%arg0: i32, %arg1: i32) -> (i32, i32) {
    %c0_i32 = arith.constant 0 : i32
    %c0_i32_0 = arith.constant 0 : i32
    %c0_i32_1 = arith.constant 0 : i32
    return %c0_i32, %c0_i32_0 : i32, i32
  }
  func.func @transform_8(%arg0: i32, %arg1: i32) -> (i32, i32) {
    %c0_i32 = arith.constant 0 : i32
    %c0_i32_0 = arith.constant 0 : i32
    %c0_i32_1 = arith.constant 0 : i32
    return %c0_i32, %c0_i32_0 : i32, i32
  }
  func.func @transform_9(%arg0: i32, %arg1: i32) -> (i32, i32) {
    %c0_i32 = arith.constant 0 : i32
    %c0_i32_0 = arith.constant 0 : i32
    %c0_i32_1 = arith.constant 0 : i32
    return %c0_i32, %c0_i32_0 : i32, i32
  }
  func.func @transform_10(%arg0: i32, %arg1: i32) -> (i32, i32) {
    %c0_i32 = arith.constant 0 : i32
    %c0_i32_0 = arith.constant 0 : i32
    %c0_i32_1 = arith.constant 0 : i32
    return %c0_i32, %c0_i32_0 : i32, i32
  }
  func.func @transform_12(%arg0: i32, %arg1: i32) -> (i32, i32) {
    %c0_i32 = arith.constant 0 : i32
    %c0_i32_0 = arith.constant 0 : i32
    %c0_i32_1 = arith.constant 0 : i32
    return %c0_i32, %c0_i32_0 : i32, i32
  }
  func.func @transform_14(%arg0: i32, %arg1: i32) -> (i32, i32) {
    %c0_i32 = arith.constant 0 : i32
    %c0_i32_0 = arith.constant 0 : i32
    %c0_i32_1 = arith.constant 0 : i32
    return %c0_i32, %c0_i32_0 : i32, i32
  }
  func.func @transform_15(%arg0: i32, %arg1: i32) -> (i32, i32) {
    %c0_i32 = arith.constant 0 : i32
    %c0_i32_0 = arith.constant 0 : i32
    %c0_i32_1 = arith.constant 0 : i32
    return %c0_i32, %c0_i32_0 : i32, i32
  }
  func.func @transform_16(%arg0: i32, %arg1: i32) -> (i32, i32) {
    %c0_i32 = arith.constant 0 : i32
    %c0_i32_0 = arith.constant 0 : i32
    %c0_i32_1 = arith.constant 0 : i32
    return %c0_i32, %c0_i32_0 : i32, i32
  }
  func.func @transform_17(%arg0: i32, %arg1: i32) -> (i32, i32, i32) {
    %c0_i32 = arith.constant 0 : i32
    %c0_i32_0 = arith.constant 0 : i32
    return %arg0, %arg1, %c0_i32 : i32, i32, i32
  }
}

</mosaic_0001>

<bundles_post_ra>
// kernel: tpu_custom_call.1
= control target key start
LH: loop header
LB: loop body
LE: loop exit
PB: predicated region body
PF: predicated region fallthrough
CT: control target
= control target key end

     0   :  { %s2207_s0 = inlined_call_operand.vmem [shape: f32[2,8,32], index: 0, kind: input, shape index: {}]   ;;  %s2208_s1 = inlined_call_operand.vmem [shape: f32[2,8,32], index: 1, kind: input, shape index: {}]   ;;  %s2209_s2 = inlined_call_operand.vmem [shape: bf16[32,32], index: 2, kind: input, shape index: {}]   ;;  %s2210_s3 = inlined_call_operand.vmem [shape: f32[1,32], index: 3, kind: input, shape index: {}]   ;;  %s2211_s4 = inlined_call_operand.vmem [shape: bf16[32,32], index: 4, kind: input, shape index: {}]   ;;  %s2212_s5 = inlined_call_operand.vmem [shape: bf16[32,32], index: 5, kind: input, shape index: {}]   ;;  %s2213_s6 = inlined_call_operand.vmem [shape: f32[1,32], index: 6, kind: input, shape index: {}]   ;;  %s2214_s7 = inlined_call_operand.hbm [shape: bf16[4,8,32], index: 7, kind: input, shape index: {}]   ;;  %s2215_s8 = inlined_call_operand.vmem [shape: f32[1,32], index: 8, kind: input, shape index: {}]   ;;  %s2216_s9 = inlined_call_operand.vmem [shape: f32[1,32], index: 9, kind: input, shape index: {}]   ;;  %s2217_s10 = inlined_call_operand.vmem [shape: f32[1,32], index: 10, kind: input, shape index: {}]   ;;  %s2218_s11 = inlined_call_operand.hbm [shape: bf16[32,128], index: 11, kind: input, shape index: {}]   ;;  %s2219_s12 = inlined_call_operand.vmem [shape: f32[1,128], index: 12, kind: input, shape index: {}]   ;;  %s2220_s13 = inlined_call_operand.vmem [shape: bf16[128,32], index: 13, kind: input, shape index: {}]   ;;  %s2221_s14 = inlined_call_operand.vmem [shape: f32[1,32], index: 14, kind: input, shape index: {}]   ;;  %s2222_s15 = inlined_call_operand.vmem [shape: f32[1,32], index: 15, kind: input, shape index: {}]   ;;  %s2223_s16 = inlined_call_operand.vmem [shape: f32[1,32], index: 16, kind: input, shape index: {}]   ;;  %s2224_s17 = inlined_call_operand.hbm [shape: f32[2,8,32], index: 17, kind: output, shape index: {}]  }
   0x1   :  { %2236 = sst [smem:[#allocation38_spill]] %s2207_s0 }
   0x2   :  { %2237 = sst [smem:[#allocation39_spill]] %s2208_s1 }
   0x3   :  { %2238 = sst [smem:[#allocation40_spill]] %s2209_s2 }
   0x4   :  { %2239 = sst [smem:[#allocation41_spill]] %s2221_s14 }
   0x5   :  { %2240 = sst [smem:[#allocation42_spill]] %s2224_s17 }
   0x6   :  { %22 = vsyncpa [#allocation12], 0 }
   0x7   :  { %24 = vsyncpa [#allocation12 + $0x1], 0  ;;  %s1921_s24 = smov 0   ;;  %s1923_s25 = smov 0  }
   0x8   :  { %s1925_s26 = smov 0   ;;  %s1927_s27 = smov 0  }
   0x9   :  { %s1929_s28 = smov 0   ;;  %s1931_s29 = smov 0  }
   0xa LB: > { %2241 = sst [smem:[#allocation30_spill]] %s1803_s24  ;;  %s1472_s0 = sadd.s32 4294967295, %s1823_s29   ;;  %s1823_s29 = sphi %s1931_s29, %s30_s29   ;;  %s1819_s28 = sphi %s1929_s28, %s2267_s28   ;;  %s1815_s27 = sphi %s1927_s27, %s2266_s27   ;;  %s1811_s26 = sphi %s1925_s26, %s2265_s26   ;;  %s1807_s25 = sphi %s1923_s25, %s2269_s25   ;;  %s1803_s24 = sphi %s1921_s24, %s2268_s24  }
   0xb   : > { %2242 = sst [smem:[#allocation31_spill]] %s1811_s26  ;;  %s1473_s30 = sadd.s32 4294967294, %s1823_s29  }
   0xc   : > { %2243 = sst [smem:[#allocation32_spill]] %s1819_s28  ;;  %s42_s18 = sadd.s32 1, %s1819_s28 }
   0xd   : > { %2244 = sst [smem:[#allocation33_spill]] %s1823_s29  ;;  %s294_s19 = sadd.s32 1, %s1811_s26 }
   0xe   : > { %p44_p0 = scmp.ge.s32.totalorder %s42_s18, 2  ;;  %p304_p1 = scmp.ne.s32.totalorder %s1811_s26, %s1807_s25 }
   0xf   : > { %p305_p2 = scmp.eq.s32.totalorder %s1472_s0, 1  ;;  %p310_p3 = scmp.ne.s32.totalorder %s1807_s25, %s1803_s24 }
  0x10   : > { %s2271_s18 = smov (%p44_p0, %s42_s18), 0  ;;  %p311_p5 = scmp.eq.s32.totalorder %s1473_s30, 1 }
  0x11   : > { %2245 = sst [smem:[#allocation34_spill]] %s2271_s18  ;;  %p1961_p4 = por %p305_p2, %p304_p1 }
  0x12   : > { %s289_s20 = ssub.s32 %s1819_s28, %s2271_s18  ;;  %p1476_p6 = scmp.ge.s32.totalorder %s1823_s29, 1 }
  0x13   : > { %s2246_s1 = scalar_select %p1961_p4, 1, 0 }
  0x14   : > { %p292_p7 = scmp.eq.s32.totalorder %s289_s20, 0  ;;  %p1968_p8 = por %p311_p5, %p310_p3 }
  0x15   : > { %2247 = sst [smem:[#allocation35_spill]] %s2246_s1  ;;  %p373_p9 = scmp.lt.s32.totalorder %s1823_s29, 3 }
  0x16   : > { %s2248_s21 = scalar_select %p1968_p8, 1, 0 }
  0x17   : > { %s1974_s22 = scalar_select %p292_p7, %s1811_s26, %s294_s19  }
  0x18   : > { %2249 = sst [smem:[#allocation36_spill]] %s2248_s21  ;;  %p374_p10 = pnand %p1476_p6, %p373_p9 }
  0x19   : > { %2250 = sst [smem:[#allocation37_spill]] %s1974_s22  ;;  %s2235_s23 = sand.u32 (!%p374_p10), 1, %s1807_s25  }
  0x1a   : > { %377 = sbr.rel (%p374_p10) target bundleno = 1860 (0x744), region = 64  ;;  %p419_p11 = scmp.lt.s32.totalorder (!%p374_p10), %s1815_s27, 1 }
  0x1b   : > { %s2251_s2 = sld [smem:[#allocation40_spill]] (!%p374_p10)  ;;  %s1986_s28 = sshll.u32 (!%p374_p10), %s2235_s23, 3 }
  0x1c   : > { %s2252_s24 = sld [smem:[#allocation38_spill]] (!%p374_p10) }
  0x1d   : > { %s2253_s30 = sld [smem:[#allocation39_spill]] (!%p374_p10) }
  0x1f   : > { %s420_s19 = scalar_select %p419_p11, %s1815_s27, 1 }
  0x21   : > { %v445_v0 = vld [vmem:[%s2251_s2] sm:$0xff]  ;;  %v447_v1 = vld [vmem:[%s2251_s2 + $0x8] sm:$0xff]  ;;  %s1478_s22 = sshll.u32 %s420_s19, 3 }
  0x22   : > { %446 = vst [vmem:[#allocation2] sm:$0xff] %v445_v0  ;;  %s1992_s29 = scalar_lea.vmem %s2252_s24, %s1478_s22 }
  0x23   : > { %448 = vst [vmem:[#allocation2 + $0x8] sm:$0xff] %v447_v1  ;;  %s1997_s1 = scalar_lea.vmem %s2253_s30, %s1478_s22 }
  0x24   : > { %454 = vsyncadd [#allocation10], 256  ;;  %v466_v2 = vld [vmem:[%s2211_s4] sm:$0xff]  ;;  %v468_v3 = vld [vmem:[%s2211_s4 + $0x8] sm:$0xff] }
  0x25   : > { %467 = vst [vmem:[#allocation3 + $0x8] sm:$0xff] %v466_v2 }
  0x26   : > { %469 = vst [vmem:[#allocation3] sm:$0xff] %v468_v3 }
  0x27   : > { %475 = vsyncadd [#allocation10 + $0x1], 256  ;;  %v487_v4 = vld [vmem:[%s2212_s5] sm:$0xff]  ;;  %v489_v5 = vld [vmem:[%s2212_s5 + $0x8] sm:$0xff] }
  0x28   : > { %488 = vst [vmem:[#allocation4 + $0x8] sm:$0xff] %v487_v4 }
  0x29   : > { %490 = vst [vmem:[#allocation4] sm:$0xff] %v489_v5 }
  0x2a   : > { %496 = vsyncadd [#allocation10 + $0x2], 256  ;;  %s505_s19 = sshll.u32 %s2214_s7, 4  ;;  %v536_v6 = vld [vmem:[%s2220_s13] sm:$0xff]  ;;  %v538_v7 = vld [vmem:[%s2220_s13 + $0x8] sm:$0xff]  ;;  %s1825_s20 = smov [#allocation5]   ;;  %s506_s19 = int_to_ptr.hbm [resolvable:$true] %s505_s19 }
  0x2b   : > { %s507_s24 = sshll.u32 %s1825_s20, 4  ;;  %537 = vst [vmem:[#allocation7] sm:$0xff] %v536_v6  ;;  %v540_v8 = vld [vmem:[%s2220_s13 + $0x10] sm:$0xff]  ;;  %v542_v9 = vld [vmem:[%s2220_s13 + $0x18] sm:$0xff]  ;;  %s519_s2 = sshll.u32 %s2218_s11, 4  ;;  %v544_v10 = vld [vmem:[%s2220_s13 + $0x20] sm:$0xff]  ;;  %s508_s24 = int_to_ptr.vmem [resolvable:$true] %s507_s24  ;;  %s520_s2 = int_to_ptr.hbm [resolvable:$true] %s519_s2 }
  0x2c   : > { %539 = vst [vmem:[#allocation7 + $0x38] sm:$0xff] %v538_v7  ;;  %510 = dma.hbm_to_vmem [thread:$0]  %s506_s19, 256, %s508_s24, [#allocation10 + $0x3]  ;;  %v546_v11 = vld [vmem:[%s2220_s13 + $0x28] sm:$0xff]  ;;  %v548_v12 = vld [vmem:[%s2220_s13 + $0x30] sm:$0xff]  ;;  %v550_v13 = vld [vmem:[%s2220_s13 + $0x38] sm:$0xff] }
  0x2d   : > { %541 = vst [vmem:[#allocation7 + $0x8] sm:$0xff] %v540_v8  ;;  %s1826_s17 = smov [#allocation6]  }
  0x2e   : > { %543 = vst [vmem:[#allocation7 + $0x18] sm:$0xff] %v542_v9  ;;  %s521_s21 = sshll.u32 %s1826_s17, 4  ;;  %s522_s21 = int_to_ptr.vmem [resolvable:$true] %s521_s21 }
  0x2f   : > { %545 = vst [vmem:[#allocation7 + $0x20] sm:$0xff] %v544_v10  ;;  %524 = dma.hbm_to_vmem [thread:$0]  %s520_s2, 256, %s522_s21, [#allocation10 + $0x4] }
  0x30   : > { %547 = vst [vmem:[#allocation7 + $0x10] sm:$0xff] %v546_v11 }
  0x31   : > { %549 = vst [vmem:[#allocation7 + $0x30] sm:$0xff] %v548_v12 }
  0x32   : > { %551 = vst [vmem:[#allocation7 + $0x28] sm:$0xff] %v550_v13 }
  0x33   : > { %557 = vsyncadd [#allocation10 + $0x5], 1024 }
  0x34   : > { %1785 = dma.done.wait [#allocation10], 256 }
  0x35   : > { %1786 = vsyncadd [#allocation10], 4294967040 }
  0x36   : > { %1787 = dma.done.wait [#allocation10 + $0x1], 256 }
  0x37   : > { %1788 = vsyncadd [#allocation10 + $0x1], 4294967040 }
  0x38   : > { %1789 = dma.done.wait [#allocation10 + $0x2], 256 }
  0x39   : > { %1790 = vsyncadd [#allocation10 + $0x2], 4294967040 }
  0x3a   : > { %1791 = dma.done.wait [#allocation10 + $0x3], 256 }
  0x3b   : > { %1792 = vsyncadd [#allocation10 + $0x3], 4294967040 }
  0x3c   : > { %1793 = dma.done.wait [#allocation10 + $0x4], 256 }
  0x3d   : > { %1794 = vsyncadd [#allocation10 + $0x4], 4294967040 }
  0x3e   : > { %1795 = dma.done.wait [#allocation10 + $0x5], 1024 }
  0x3f   : > { %1796 = vsyncadd [#allocation10 + $0x5], 4294966272  ;;  %vm578_vm0 = vcmask 261120   ;;  %v575_v14 = vld [vmem:[%s1992_s29] sm:$0xff]  ;;  %v1827_v18 = vmov 32.0   ;;  %v1572_v35 = vld [vmem:[#allocation3] sm:$0xff] }
  0x40   : > { %v579_v15 = vsel %vm578_vm0, %v575_v14, 0.0  ;;  %v2045_v16 = vld [vmem:[%s1997_s1] sm:$0xff]  ;;  %1659 = vrcp.f32 %v1827_v18  ;;  %642 = vmatpush.bf16.msra.mxu1 %v1572_v35  ;;  %v1571_v36 = vld [vmem:[#allocation3 + $0x8] sm:$0xff]  ;;  %v1576_v37 = vld [vmem:[#allocation2 + $0x8] sm:$0xff]  ;;  %vm683_vm8 = vcmask 60416   ;;  %s1828_s20 = smov 104  }
  0x41   : > { %580 = vadd.xlane.f32.xlu0 %v579_v15  ;;  %v723_v17 = vsel %vm578_vm0, %v2045_v16, 0.0  ;;  %790 = vmatpush.bf16.msra.mxu2 %v1576_v37  ;;  %v1575_v39 = vld [vmem:[#allocation2] sm:$0xff]  ;;  %v1573_v44 = vld [vmem:[#allocation4 + $0x8] sm:$0xff]  ;;  %s1829_s18 = smov 112   ;;  %vm815_vm9 = vcmask 64512   ;;  %s1830_s26 = smov 120  }
  0x42   : > { %v1574_v42 = vld [vmem:[#allocation4] sm:$0xff]  ;;  %vm947_vm10 = vcmask 1043456   ;;  %s2254_s17 = sld [smem:[#allocation41_spill]]  ;;  %s2258_s24 = scalar_lea.vmem [#allocation11], %s1986_s28 }
  0x43   : > { %v1648_v55 = vld [vmem:[%s2216_s9] ss:$0 sm:$0xff]  ;;  %s2256_s29 = sld [smem:[#allocation42_spill]]  ;;  %s1329_s2 = sshll.u32 %s2258_s24, 4  ;;  %s1330_s2 = int_to_ptr.vmem [resolvable:$true] %s1329_s2 }
  0x44   : > { %643 = vmatpush.bf16.msra.mxu1 %v1571_v36  ;;  %v1649_v59 = vld [vmem:[%s2217_s10] ss:$0 sm:$0xff]  ;;  %s2260_s0 = sand.u32 1, %s1807_s25  }
  0x45   : > { %791 = vmatpush.bf16.msra.mxu2 %v1575_v39  ;;  %v1650_v2 = vld [vmem:[%s2216_s9] ss:$0 sm:$0xff]  ;;  %s1316_s30 = scalar_lea.sflag [#allocation12], %s2260_s0 }
  0x46   : > { %v1660_v19 = vpop.eup %1659  ;;  %v1651_v5 = vld [vmem:[%s2217_s10] ss:$0 sm:$0xff] }
  0x47   : > { %v583_v20 = vmul.f32 32.0, %v1660_v19  ;;  %vm587_vm1 = vweird.f32 %v1660_v19  ;;  %v1653_v15 = vld [vmem:[%s2213_s6] ss:$0 sm:$0xff] }
  0x48   : > { %675 = vmatpush.bf16.msrb.mxu1 %v1574_v42 }
  0x49   : > { %724 = vadd.xlane.f32.xlu0 %v723_v17  ;;  %v584_v21 = vsub.f32 1.0, %v583_v20  ;;  %s2257_s1 = smov %s2256_s29 }
  0x4a   : > { %s1753_s22 = scalar_lea.hbm %s2257_s1, 16 }
  0x4b   : > { %v585_v22 = vmul.f32 %v1660_v19, %v584_v21 }
  0x4c   : > { %676 = vmatpush.bf16.msrb.mxu1 %v1573_v44 }
  0x4d   : > { %v586_v23 = vadd.f32 %v1660_v19, %v585_v22 }
  0x4f   : > { %v2049_v24 = vsel %vm587_vm1, %v1660_v19, %v586_v23 }
  0xb4   : > { %v581_v25 = vpop.xlane.xlu0 %580 }
  0xb5   : > { %v589_v26 = vmul.f32 %v2049_v24, %v581_v25 }
  0xb7   : > { %v590_v27 = vsub.f32 %v575_v14, %v589_v26  ;;  %v1652_v14 = vld [vmem:[%s2210_s3] ss:$0 sm:$0xff] }
  0xb9   : > { %v591_v28 = vmul.f32 %v590_v27, %v590_v27 }
  0xbb   : > { %v592_v29 = vsel %vm578_vm0, %v591_v28, 0.0 }
  0xbc   : > { %593 = vadd.xlane.f32.xlu1 %v592_v29  ;;  %v725_v30 = vpop.xlane.xlu0 %724 }
  0xbd   : > { %v733_v31 = vmul.f32 %v725_v30, %v2049_v24 }
  0xbf   : > { %v734_v32 = vsub.f32 %v2045_v16, %v733_v31 }
  0xc1   : > { %v735_v33 = vmul.f32 %v734_v32, %v734_v32 }
  0xc3   : > { %v736_v34 = vsel %vm578_vm0, %v735_v33, 0.0 }
  0xc4   : > { %737 = vadd.xlane.f32.xlu1 %v736_v34 }
 0x12f   : > { %v594_v38 = vpop.xlane.xlu1 %593 }
 0x130   : > { %v595_v40 = vmul.f32 %v594_v38, %v2049_v24 }
 0x132   : > { %v596_v41 = vadd.f32 1e-05, %v595_v40 }
 0x134   : > { %1661 = vrsqrt.f32 %v596_v41  ;;  %vm603_vm3 = vweird.f32 %v596_v41 }
 0x137   : > { %v738_v43 = vpop.xlane.xlu1 %737 }
 0x138   : > { %v739_v45 = vmul.f32 %v738_v43, %v2049_v24 }
 0x13a   : > { %v1662_v46 = vpop.eup %1661  ;;  %v740_v47 = vadd.f32 1e-05, %v739_v45 }
 0x13b   : > { %v598_v48 = vmul.f32 %v1662_v46, %v596_v41  ;;  %vm604_vm2 = vweird.f32 %v1662_v46 }
 0x13c   : > { %1663 = vrsqrt.f32 %v740_v47  ;;  %vm605_vm4 = vmor %vm603_vm3, %vm604_vm2  ;;  %vm747_vm6 = vweird.f32 %v740_v47 }
 0x13d   : > { %v599_v49 = vmul.f32 %v1662_v46, %v598_v48 }
 0x13f   : > { %v600_v50 = vmul.f32 0.5, %v599_v49 }
 0x141   : > { %v601_v51 = vsub.f32 1.5, %v600_v50 }
 0x142   : > { %v1664_v52 = vpop.eup %1663 }
 0x143   : > { %v602_v53 = vmul.f32 %v1662_v46, %v601_v51  ;;  %v742_v54 = vmul.f32 %v1664_v52, %v740_v47  ;;  %vm748_vm5 = vweird.f32 %v1664_v52 }
 0x144   : > { %vm749_vm7 = vmor %vm747_vm6, %vm748_vm5 }
 0x145   : > { %v606_v56 = vsel %vm605_vm4, %v1662_v46, %v602_v53  ;;  %v743_v57 = vmul.f32 %v1664_v52, %v742_v54 }
 0x146   : > { %v607_v58 = vmul.f32 %v606_v56, %v590_v27 }
 0x147   : > { %v744_v60 = vmul.f32 0.5, %v743_v57 }
 0x148   : > { %v611_v61 = vmul.f32 %v1648_v55, %v607_v58 }
 0x149   : > { %v745_v62 = vsub.f32 1.5, %v744_v60 }
 0x14a   : > { %v615_v63 = vadd.f32 %v1649_v59, %v611_v61 }
 0x14b   : > { %v746_v0 = vmul.f32 %v1664_v52, %v745_v62 }
 0x14c   : > { %v616_v1 = vpack.c.bf16 %v615_v63, %v615_v63 }
 0x14d   : > { %v750_v3 = vsel %vm749_vm7, %v1664_v52, %v746_v0 }
 0x14e   : > { %1488 = vmatmul.msk.bf16.vlgmr.msra.gmra.mxu1 %vm578_vm0, %v616_v1  ;;  %v751_v4 = vmul.f32 %v750_v3, %v734_v32 }
 0x150   : > { %v755_v6 = vmul.f32 %v1650_v2, %v751_v4 }
 0x152   : > { %v759_v7 = vadd.f32 %v1651_v5, %v755_v6 }
 0x154   : > { %v760_v8 = vpack.c.bf16 %v759_v7, %v759_v7 }
 0x156   : > { %1506 = vmatmul.msk.bf16.vlgmr.msra.gmra.mxu2 %vm578_vm0, %v760_v8 }
 0x15e   : > { %1497 = vmatmul.msk.bf16.vlgmr.msrb.gmra.mxu1 %vm578_vm0, %v616_v1 }
 0x1cb   : > { %v645_v9 = vpop.f32.mrf.mxu1 }
 0x1cc   : > { %v682_v10 = vpack.c.bf16 %v645_v9, %v645_v9 }
 0x1ce   : > { %684 = vst.msk [vmem:[#allocation8] sm:$0xf] %vm683_vm8, %v682_v10  ;;  %709 = vrot.lane.b32.xlu2 %v682_v10, %s1828_s20  ;;  %699 = vrot.lane.b32.xlu1 %v682_v10, %s1829_s18 }
 0x1d3   : > { %v647_v11 = vpop.f32.mrf.mxu1 }
 0x1d5   : > { %v811_v12 = vld [vmem:[#allocation8] sm:$0xf] }
 0x1d6   : > { %688 = vrot.lane.b32.xlu2 %v682_v10, %s1830_s26  ;;  %v820_v13 = vsel %vm815_vm9, %v811_v12, 0 }
 0x1d7   : > { %829 = vmatpush.bf16.xpose.msra.mxu3 %v820_v13 }
 0x1d9   : > { %v793_v17 = vpop.f32.mrf.mxu2 }
 0x1da   : > { %v794_v18 = vadd.f32 %v1652_v14, %v793_v17 }
 0x1db   : > { %v678_v19 = vpop.f32.mrf.mxu1 }
 0x1dc   : > { %v679_v20 = vadd.f32 %v1653_v15, %v678_v19  ;;  %804 = vrot.lane.b32.xlu0 %v794_v18, %s1828_s20  ;;  %v807_v21 = vpack.c.bf16 %v794_v18, %v794_v18 }
 0x1de   : > { %v2085_v22 = vpack.c.bf16 %v679_v20, %v679_v20  ;;  %798 = vrot.lane.b32.xlu2 %v794_v18, %s1830_s26  ;;  %1507 = vmatmul.msk.bf16.vlgmr.msra.gmra.mxu3 %vm815_vm9, %v807_v21 }
 0x1e0   : > { %686 = vst.msk [vmem:[#allocation9] sm:$0xf] %vm683_vm8, %v2085_v22 }
 0x1e1   : > { %v795_v23 = vpop.f32.mrf.mxu2 }
 0x1e3   : > { %v680_v25 = vpop.f32.mrf.mxu1 }
 0x1e6   : > { %801 = vrot.lane.b32.xlu2 %v794_v18, %s1829_s18 }
 0x1e7   : > { %v940_v26 = vld [vmem:[#allocation9] sm:$0xf] }
 0x1e8   : > { %v949_v27 = vsel %vm947_vm10, %v940_v26, 0 }
 0x1e9   : > { %958 = vmatpush.bf16.msrb.mxu3 %v949_v27 }
 0x228   : > { %v710_v28 = vpop.permute.xlu2 %709 }
 0x229   : > { %713 = vst.msk [vmem:[#allocation8 + $0xc] sm:$0xf] %vm683_vm8, %v710_v28  ;;  %v1025_v28 = vld [vmem:[#allocation5] sm:$0xf] }
 0x230   : > { %v689_v29 = vpop.permute.xlu2 %688  ;;  %v814_v30 = vld [vmem:[#allocation8 + $0xc] sm:$0xf] }
 0x231   : > { %692 = vst.msk [vmem:[#allocation8 + $0x4] sm:$0xf] %vm683_vm8, %v689_v29  ;;  %v877_v31 = vsel %vm815_vm9, %v814_v30, 0  ;;  %v1033_v29 = vsel %vm947_vm10, %v1025_v28, 0 }
 0x232   : > { %886 = vmatpush.bf16.xpose.msrb.mxu2 %v877_v31  ;;  %1042 = vmatpush.bf16.msra.mxu3 %v1033_v29 }
 0x238   : > { %v812_v32 = vld [vmem:[#allocation8 + $0x4] sm:$0xf]  ;;  %v799_v34 = vpop.permute.xlu2 %798 }
 0x239   : > { %v839_v33 = vsel %vm815_vm9, %v812_v32, 0  ;;  %v808_v35 = vpack.c.bf16 %v799_v34, %v799_v34 }
 0x23a   : > { %848 = vmatpush.bf16.xpose.msra.mxu0 %v839_v33 }
 0x240   : > { %v700_v36 = vpop.permute.xlu1 %699  ;;  %v802_v39 = vpop.permute.xlu2 %801 }
 0x241   : > { %703 = vst.msk [vmem:[#allocation8 + $0x8] sm:$0xf] %vm683_vm8, %v700_v36  ;;  %1508 = vmatmul.msk.bf16.vlgmr.msra.gmra.mxu0 %vm815_vm9, %v808_v35  ;;  %v809_v41 = vpack.c.bf16 %v802_v39, %v802_v39 }
 0x248   : > { %v813_v37 = vld [vmem:[#allocation8 + $0x8] sm:$0xf] }
 0x249   : > { %v858_v38 = vsel %vm815_vm9, %v813_v37, 0 }
 0x24a   : > { %867 = vmatpush.bf16.xpose.msra.mxu1 %v858_v38 }
 0x24e   : > { %v805_v40 = vpop.permute.xlu0 %804 }
 0x24f   : > { %v810_v42 = vpack.c.bf16 %v805_v40, %v805_v40 }
 0x251   : > { %1509 = vmatmul.msk.bf16.vlgmr.msra.gmra.mxu1 %vm815_vm9, %v809_v41  ;;  %1510 = vmatmul.msk.bf16.vlgmr.msrb.gmra.mxu2 %vm815_vm9, %v810_v42 }
 0x261   : > { %v831_v43 = vpop.f32.mrf.mxu3 }
 0x262   : > { %v892_v44 = vsel %vm815_vm9, %v831_v43, -inf }
 0x263   : > { %893 = vmax.xlane.f32.xlu2 %v892_v44 }
 0x269   : > { %v833_v45 = vpop.f32.mrf.mxu3 }
 0x26a   : > { %v1028_v45 = vld [vmem:[#allocation5 + $0xc] sm:$0xf] }
 0x2be   : > { %v850_v46 = vpop.f32.mrf.mxu0 }
 0x2bf   : > { %v895_v47 = vsel %vm815_vm9, %v850_v46, -inf }
 0x2c0   : > { %896 = vmax.xlane.f32.xlu1 %v895_v47 }
 0x2c6   : > { %v852_v48 = vpop.f32.mrf.mxu0 }
 0x2ce   : > { %v869_v49 = vpop.f32.mrf.mxu1 }
 0x2cf   : > { %v898_v50 = vsel %vm815_vm9, %v869_v49, -inf }
 0x2d0   : > { %899 = vmax.xlane.f32.xlu2 %v898_v50  ;;  %v1027_v50 = vld [vmem:[#allocation5 + $0x8] sm:$0xf] }
 0x2d4   : > { %v888_v51 = vpop.f32.mrf.mxu2 }
 0x2d5   : > { %v901_v52 = vsel %vm815_vm9, %v888_v51, -inf }
 0x2d6   : > { %902 = vmax.xlane.f32.xlu0 %v901_v52  ;;  %v894_v53 = vpop.xlane.xlu2 %893  ;;  %v871_v54 = vpop.f32.mrf.mxu1 }
 0x2d7   : > { %v904_v55 = vsub.f32 %v831_v43, %v894_v53  ;;  %v1026_v43 = vld [vmem:[#allocation5 + $0x4] sm:$0xf] }
 0x2d8   : > { %v1052_v44 = vsel %vm947_vm10, %v1026_v43, 0  ;;  %v1583_v43 = vld [vmem:[#allocation7 + $0x20] sm:$0xff] }
 0x2d9   : > { %v908_v56 = vmul.f32 1.442695, %v904_v55 }
 0x2db   : > { %1665 = vpow2.f32 %v908_v56 }
 0x2dc   : > { %v890_v57 = vpop.f32.mrf.mxu2 }
 0x2e1   : > { %v1666_v58 = vpop.eup %1665 }
 0x2e2   : > { %v916_v59 = vsel %vm815_vm9, %v1666_v58, 0.0 }
 0x2e3   : > { %917 = vadd.xlane.f32.xlu0 %v916_v59 }
 0x2e8   : > { %714 = vrot.lane.b32.xlu2 %v2085_v22, %s1828_s20  ;;  %s1562_s20 = sshll.u32 %s1815_s27, 3  ;;  %s2259_s27 = smov %s2258_s24 }
 0x2e9   : > { %s1327_s19 = scalar_lea.hbm %s2256_s29, %s1562_s20 }
 0x2ea   : > { %s1331_s14 = sshll.u32 %s1327_s19, 4  ;;  %s1332_s14 = int_to_ptr.hbm [resolvable:$true] %s1331_s14 }
 0x2f7   : > { %694 = vrot.lane.b32.xlu0 %v2085_v22, %s1830_s26 }
 0x333   : > { %v897_v60 = vpop.xlane.xlu1 %896 }
 0x334   : > { %v905_v61 = vsub.f32 %v850_v46, %v897_v60  ;;  %v1090_v46 = vsel %vm947_vm10, %v1028_v45, 0 }
 0x336   : > { %v910_v62 = vmul.f32 1.442695, %v905_v61 }
 0x338   : > { %1667 = vpow2.f32 %v910_v62 }
 0x33e   : > { %v1668_v63 = vpop.eup %1667 }
 0x33f   : > { %v919_v0 = vsel %vm815_vm9, %v1668_v63, 0.0 }
 0x340   : > { %920 = vadd.xlane.f32.xlu1 %v919_v0 }
 0x343   : > { %v900_v1 = vpop.xlane.xlu2 %899 }
 0x344   : > { %v906_v2 = vsub.f32 %v869_v49, %v900_v1 }
 0x346   : > { %v912_v3 = vmul.f32 1.442695, %v906_v2 }
 0x348   : > { %1669 = vpow2.f32 %v912_v3 }
 0x349   : > { %v903_v4 = vpop.xlane.xlu0 %902 }
 0x34a   : > { %v907_v5 = vsub.f32 %v888_v51, %v903_v4  ;;  %v1071_v51 = vsel %vm947_vm10, %v1027_v50, 0 }
 0x34b   : > { %v715_v6 = vpop.permute.xlu2 %714 }
 0x34c   : > { %v914_v7 = vmul.f32 1.442695, %v907_v5  ;;  %718 = vst.msk [vmem:[#allocation9 + $0xc] sm:$0xf] %vm683_vm8, %v715_v6  ;;  %v1654_v6 = vld [vmem:[%s2215_s8] ss:$0 sm:$0xff] }
 0x34e   : > { %v1670_v8 = vpop.eup %1669  ;;  %1671 = vpow2.f32 %v914_v7 }
 0x34f   : > { %v922_v9 = vsel %vm815_vm9, %v1670_v8, 0.0 }
 0x350   : > { %923 = vadd.xlane.f32.xlu2 %v922_v9 }
 0x353   : > { %v943_v10 = vld [vmem:[#allocation9 + $0xc] sm:$0xf] }
 0x354   : > { %v1672_v11 = vpop.eup %1671  ;;  %v1006_v12 = vsel %vm947_vm10, %v943_v10, 0 }
 0x355   : > { %1015 = vmatpush.bf16.msra.mxu2 %v1006_v12  ;;  %v925_v13 = vsel %vm815_vm9, %v1672_v11, 0.0 }
 0x356   : > { %v918_v14 = vpop.xlane.xlu0 %917  ;;  %926 = vadd.xlane.f32.xlu1 %v925_v13 }
 0x357   : > { %1673 = vrcp.f32 %v918_v14 }
 0x359   : > { %1099 = vmatpush.bf16.msrb.mxu2 %v1090_v46 }
 0x35d   : > { %v1674_v15 = vpop.eup %1673 }
 0x35e   : > { %v932_v17 = vmul.f32 %v1674_v15, %v1666_v58 }
 0x360   : > { %v936_v18 = vpack.c.bf16 %v932_v17, %v932_v17 }
 0x362   : > { %1511 = vmatmul.msk.bf16.vlgmr.msrb.gmra.mxu3 %vm815_vm9, %v936_v18 }
 0x369   : > { %v695_v19 = vpop.permute.xlu0 %694 }
 0x36a   : > { %698 = vst.msk [vmem:[#allocation9 + $0x4] sm:$0xf] %vm683_vm8, %v695_v19  ;;  %v1578_v19 = vld [vmem:[#allocation6 + $0x8] sm:$0xff] }
 0x36b   : > { %1180 = vmatpush.bf16.msrb.mxu3 %v1578_v19 }
 0x36f   : > { %704 = vrot.lane.b32.xlu1 %v2085_v22, %s1829_s18  ;;  %s1747_s18 = sshra.s32 %s1332_s14, 4  ;;  %s1748_s18 = int_to_ptr.hbm [resolvable:$true] %s1747_s18 }
 0x370   : > { %s1749_s26 = scalar_lea.hbm %s1748_s18, 8  ;;  %p1754_p1 = scmp.lt.s32.totalorder %s1748_s18, %s2257_s1 }
 0x371   : > { %v941_v20 = vld [vmem:[#allocation9 + $0x4] sm:$0xf]  ;;  %p1750_p12 = scmp.ne.s32.totalorder %s1748_s18, %s1749_s26  ;;  %p1755_p2 = scmp.lt.s32.totalorder %s1753_s22, %s1749_s26 }
 0x372   : > { %v968_v21 = vsel %vm947_vm10, %v941_v20, 0  ;;  %v1577_v20 = vld [vmem:[#allocation6] sm:$0xff] }
 0x373   : > { %977 = vmatpush.bf16.msrb.mxu0 %v968_v21  ;;  %1181 = vmatpush.bf16.msrb.mxu3 %v1577_v20  ;;  %p1751_p13 = pnand %p1750_p12, %p1961_p4  ;;  %p1756_p3 = por %p1755_p2, %p1754_p1 }
 0x375   : > { %p1752_p0 = pneg %p1751_p13 }
 0x377   : > { %1061 = vmatpush.bf16.msra.mxu0 %v1052_v44  ;;  %p1757_p5 = pnand %p1756_p3, %p1752_p0 }
 0x3b3   : > { %v921_v23 = vpop.xlane.xlu1 %920 }
 0x3b4   : > { %1675 = vrcp.f32 %v921_v23 }
 0x3ba   : > { %v1676_v25 = vpop.eup %1675 }
 0x3bb   : > { %v933_v26 = vmul.f32 %v1676_v25, %v1668_v63 }
 0x3bd   : > { %v937_v27 = vpack.c.bf16 %v933_v26, %v933_v26 }
 0x3bf   : > { %1512 = vmatmul.msk.bf16.vlgmr.msrb.gmra.mxu0 %vm815_vm9, %v937_v27 }
 0x3c3   : > { %v924_v33 = vpop.xlane.xlu2 %923 }
 0x3c9   : > { %v927_v30 = vpop.xlane.xlu1 %926 }
 0x3ca   : > { %1677 = vrcp.f32 %v927_v30 }
 0x3cb   : > { %1679 = vrcp.f32 %v924_v33 }
 0x3d0   : > { %v1678_v31 = vpop.eup %1677 }
 0x3d1   : > { %v935_v32 = vmul.f32 %v1678_v31, %v1672_v11  ;;  %v1680_v35 = vpop.eup %1679  ;;  %v1655_v31 = vld [vmem:[%s2222_s15] ss:$0 sm:$0xff] }
 0x3d2   : > { %v934_v38 = vmul.f32 %v1680_v35, %v1670_v8 }
 0x3d3   : > { %v939_v22 = vpack.c.bf16 %v935_v32, %v935_v32 }
 0x3d4   : > { %v938_v41 = vpack.c.bf16 %v934_v38, %v934_v38  ;;  %v1657_v38 = vld [vmem:[%s2219_s12] ss:$0 sm:$0xff] }
 0x3d5   : > { %1514 = vmatmul.msk.bf16.vlgmr.msra.gmra.mxu2 %vm815_vm9, %v939_v22 }
 0x3e1   : > { %v705_v34 = vpop.permute.xlu1 %704 }
 0x3e2   : > { %708 = vst.msk [vmem:[#allocation9 + $0x8] sm:$0xf] %vm683_vm8, %v705_v34 }
 0x3e5   : > { %v960_v36 = vpop.f32.mrf.mxu3 }
 0x3e6   : > { %v1021_v37 = vpack.c.bf16 %v960_v36, %v960_v36  ;;  %v1586_v36 = vld [vmem:[#allocation7 + $0x28] sm:$0xff] }
 0x3e7   : > { %1300 = vmatpush.bf16.msrb.mxu0 %v1586_v36 }
 0x3e8   : > { %1515 = vmatmul.msk.bf16.vlgmr.msra.gmra.mxu3 %vm815_vm9, %v1021_v37  ;;  %v1585_v37 = vld [vmem:[#allocation7 + $0x30] sm:$0xff] }
 0x3e9   : > { %v942_v39 = vld [vmem:[#allocation9 + $0x8] sm:$0xf] }
 0x3ea   : > { %v987_v40 = vsel %vm947_vm10, %v942_v39, 0 }
 0x3eb   : > { %996 = vmatpush.bf16.msrb.mxu1 %v987_v40  ;;  %1301 = vmatpush.bf16.msrb.mxu0 %v1585_v37  ;;  %v1584_v40 = vld [vmem:[#allocation7 + $0x10] sm:$0xff] }
 0x3ed   : > { %v962_v42 = vpop.f32.mrf.mxu3 }
 0x3ee   : > { %1513 = vmatmul.msk.bf16.vlgmr.msrb.gmra.mxu1 %vm815_vm9, %v938_v41 }
 0x3ef   : > { %1080 = vmatpush.bf16.msra.mxu1 %v1071_v51  ;;  %1302 = vmatpush.bf16.msrb.mxu0 %v1584_v40 }
 0x3f3   : > { %1303 = vmatpush.bf16.msrb.mxu0 %v1583_v43 }
 0x43c   : > { %v979_v47 = vpop.f32.mrf.mxu0 }
 0x43d   : > { %v1022_v48 = vpack.c.bf16 %v979_v47, %v979_v47  ;;  %v1582_v47 = vld [vmem:[#allocation7 + $0x18] sm:$0xff] }
 0x43e   : > { %1304 = vmatpush.bf16.msrb.mxu0 %v1582_v47 }
 0x43f   : > { %1516 = vmatmul.msk.bf16.vlgmr.msra.gmra.mxu0 %vm815_vm9, %v1022_v48 }
 0x444   : > { %v981_v49 = vpop.f32.mrf.mxu0 }
 0x458   : > { %v1017_v52 = vpop.f32.mrf.mxu2 }
 0x459   : > { %v1024_v53 = vpack.c.bf16 %v1017_v52, %v1017_v52  ;;  %v1581_v52 = vld [vmem:[#allocation7 + $0x8] sm:$0xff] }
 0x45a   : > { %1305 = vmatpush.bf16.msrb.mxu0 %v1581_v52 }
 0x45b   : > { %1518 = vmatmul.msk.bf16.vlgmr.msrb.gmra.mxu2 %vm815_vm9, %v1024_v53 }
 0x460   : > { %v1019_v54 = vpop.f32.mrf.mxu2 }
 0x46b   : > { %v998_v55 = vpop.f32.mrf.mxu1  ;;  %v1044_v56 = vpop.f32.mrf.mxu3 }
 0x46c   : > { %v1023_v57 = vpack.c.bf16 %v998_v55, %v998_v55  ;;  %v1105_v1 = vsel %vm578_vm0, %v1044_v56, 0.0 }
 0x46e   : > { %1517 = vmatmul.msk.bf16.vlgmr.msra.gmra.mxu1 %vm815_vm9, %v1023_v57  ;;  %v1580_v57 = vld [vmem:[#allocation7 + $0x38] sm:$0xff] }
 0x46f   : > { %1306 = vmatpush.bf16.msrb.mxu0 %v1580_v57 }
 0x473   : > { %v1000_v58 = vpop.f32.mrf.mxu1  ;;  %v1046_v59 = vpop.f32.mrf.mxu3 }
 0x4bc   : > { %v1063_v60 = vpop.f32.mrf.mxu0 }
 0x4bd   : > { %v1106_v0 = vsel %vm578_vm0, %v1063_v60, 0.0 }
 0x4be   : > { %v1107_v2 = vadd.f32 %v1106_v0, %v1105_v1 }
 0x4c4   : > { %v1065_v61 = vpop.f32.mrf.mxu0 }
 0x4c5   : > { %v1579_v61 = vld [vmem:[#allocation7] sm:$0xff] }
 0x4c6   : > { %1307 = vmatpush.bf16.msrb.mxu0 %v1579_v61 }
 0x4de   : > { %v1101_v62 = vpop.f32.mrf.mxu2 }
 0x4df   : > { %v1110_v7 = vsel %vm578_vm0, %v1101_v62, 0.0 }
 0x4e6   : > { %v1103_v63 = vpop.f32.mrf.mxu2 }
 0x4eb   : > { %v1082_v3 = vpop.f32.mrf.mxu1 }
 0x4ec   : > { %v1108_v4 = vsel %vm578_vm0, %v1082_v3, 0.0 }
 0x4ed   : > { %v1109_v5 = vadd.f32 %v1108_v4, %v1107_v2 }
 0x4ef   : > { %v1111_v8 = vadd.f32 %v1110_v7, %v1109_v5 }
 0x4f1   : > { %v1116_v9 = vadd.f32 %v1654_v6, %v1111_v8 }
 0x4f3   : > { %v1084_v10 = vpop.f32.mrf.mxu1  ;;  %v2142_v11 = vadd.f32 %v1116_v9, %v2045_v16 }
 0x4f5   : > { %v1120_v12 = vsel %vm578_vm0, %v2142_v11, 0.0 }
 0x4f6   : > { %1121 = vadd.xlane.f32.xlu0 %v1120_v12 }
 0x569   : > { %v1122_v13 = vpop.xlane.xlu0 %1121 }
 0x56a   : > { %v1123_v14 = vmul.f32 %v1122_v13, %v2049_v24 }
 0x56c   : > { %v1124_v15 = vsub.f32 %v2142_v11, %v1123_v14 }
 0x56e   : > { %v1125_v17 = vmul.f32 %v1124_v15, %v1124_v15 }
 0x570   : > { %v1126_v18 = vsel %vm578_vm0, %v1125_v17, 0.0 }
 0x571   : > { %1127 = vadd.xlane.f32.xlu1 %v1126_v18 }
 0x5e4   : > { %v1128_v21 = vpop.xlane.xlu1 %1127 }
 0x5e5   : > { %v1129_v16 = vmul.f32 %v1128_v21, %v2049_v24  ;;  %v1656_v24 = vld [vmem:[%s2223_s16] ss:$0 sm:$0xff] }
 0x5e7   : > { %v1130_v23 = vadd.f32 1e-05, %v1129_v16 }
 0x5e9   : > { %1681 = vrsqrt.f32 %v1130_v23  ;;  %vm1137_vm12 = vweird.f32 %v1130_v23 }
 0x5ef   : > { %v1682_v25 = vpop.eup %1681 }
 0x5f0   : > { %v1132_v26 = vmul.f32 %v1682_v25, %v1130_v23  ;;  %vm1138_vm11 = vweird.f32 %v1682_v25 }
 0x5f1   : > { %vm1139_vm13 = vmor %vm1137_vm12, %vm1138_vm11 }
 0x5f2   : > { %v1133_v27 = vmul.f32 %v1682_v25, %v1132_v26 }
 0x5f4   : > { %v1134_v28 = vmul.f32 0.5, %v1133_v27  ;;  %v1658_v27 = vld [vmem:[%s2254_s17] ss:$0 sm:$0xff] }
 0x5f6   : > { %v1135_v29 = vsub.f32 1.5, %v1134_v28 }
 0x5f8   : > { %v1136_v30 = vmul.f32 %v1682_v25, %v1135_v29 }
 0x5fa   : > { %v1140_v32 = vsel %vm1139_vm13, %v1682_v25, %v1136_v30 }
 0x5fb   : > { %v1141_v22 = vmul.f32 %v1140_v32, %v1124_v15 }
 0x5fd   : > { %v1145_v33 = vmul.f32 %v1655_v31, %v1141_v22 }
 0x5ff   : > { %v1149_v34 = vadd.f32 %v1656_v24, %v1145_v33 }
 0x601   : > { %v1150_v35 = vpack.c.bf16 %v1149_v34, %v1149_v34 }
 0x603   : > { %1527 = vmatmul.msk.bf16.vlgmr.msrb.gmra.mxu3 %vm578_vm0, %v1150_v35 }
 0x686   : > { %v1183_v39 = vpop.f32.mrf.mxu3 }
 0x687   : > { %v1184_v41 = vadd.f32 %v1657_v38, %v1183_v39 }
 0x689   : > { %v1188_v42 = vmul.f32 0.70710677, %v1184_v41  ;;  %v1187_v16 = vmul.f32 0.5, %v1184_v41 }
 0x68b   : > { %v1189_v44 = vmul.f32 %v1188_v42, %v1188_v42 }
 0x68d   : > { %v1190_v45 = vmin.f32 %v1189_v44, 16.0 }
 0x68e   : > { %v1185_v46 = vpop.f32.mrf.mxu3 }
 0x68f   : > { %v1191_v48 = vmul.f32 2.1237322e-06, %v1190_v45  ;;  %v1202_v49 = vmul.f32 3.8918573e-05, %v1190_v45 }
 0x691   : > { %v1192_v50 = vadd.f32 0.00028619796, %v1191_v48  ;;  %v1203_v51 = vadd.f32 0.001143296, %v1202_v49 }
 0x693   : > { %v1193_v53 = vmul.f32 %v1192_v50, %v1190_v45  ;;  %v1204_v54 = vmul.f32 %v1203_v51, %v1190_v45 }
 0x695   : > { %v1205_v55 = vadd.f32 0.014752088, %v1204_v54  ;;  %v1194_v56 = vadd.f32 0.0036580483, %v1193_v53 }
 0x697   : > { %v1206_v58 = vmul.f32 %v1205_v55, %v1190_v45  ;;  %v1195_v60 = vmul.f32 %v1194_v56, %v1190_v45 }
 0x699   : > { %v1207_v59 = vadd.f32 0.112945676, %v1206_v58  ;;  %v1196_v0 = vadd.f32 0.05243302, %v1195_v60 }
 0x69b   : > { %v1208_v62 = vmul.f32 %v1207_v59, %v1190_v45  ;;  %v1197_v3 = vmul.f32 %v1196_v0, %v1190_v45 }
 0x69d   : > { %v1209_v63 = vadd.f32 0.4994258, %v1208_v62  ;;  %v1198_v4 = vadd.f32 0.18741608, %v1197_v3 }
 0x69f   : > { %v1210_v1 = vmul.f32 %v1209_v63, %v1190_v45  ;;  %v1199_v6 = vmul.f32 %v1198_v4, %v1190_v45 }
 0x6a1   : > { %v1211_v2 = vadd.f32 1.0, %v1210_v1  ;;  %v1200_v10 = vadd.f32 1.1283791, %v1199_v6 }
 0x6a3   : > { %1683 = vrcp.f32 %v1211_v2  ;;  %v1223_v9 = vand.u32 2147483648, %v1211_v2  ;;  %v1221_v13 = vand.u32 2147483647, %v1211_v2  ;;  %vm1217_vm15 = vweird.f32 %v1211_v2 }
 0x6a4   : > { %v1201_v17 = vmul.f32 %v1200_v10, %v1188_v42 }
 0x6a5   : > { %v1224_v15 = vor.u32 1.1754944e-38, %v1223_v9  ;;  %vm1222_vm2 = vcmp.eq.f32.partialorder %v1221_v13, 8.507059e+37 }
 0x6a9   : > { %v1684_v5 = vpop.eup %1683 }
 0x6aa   : > { %v1213_v7 = vmul.f32 %v1684_v5, %v1211_v2  ;;  %vm1218_vm14 = vweird.f32 %v1684_v5 }
 0x6ab   : > { %vm1219_vm1 = vmor %vm1217_vm15, %vm1218_vm14 }
 0x6ac   : > { %v1214_v8 = vsub.f32 1.0, %v1213_v7 }
 0x6ae   : > { %v1215_v12 = vmul.f32 %v1684_v5, %v1214_v8 }
 0x6b0   : > { %v1216_v14 = vadd.f32 %v1684_v5, %v1215_v12 }
 0x6b2   : > { %v1220_v18 = vsel %vm1219_vm1, %v1684_v5, %v1216_v14 }
 0x6b3   : > { %v1225_v19 = vsel %vm1222_vm2, %v1224_v15, %v1220_v18 }
 0x6b4   : > { %v1226_v20 = vmul.f32 %v1225_v19, %v1201_v17 }
 0x6b6   : > { %v1528_v21 = vclamps-f32 %v1226_v20, 1.0 }
 0x6b8   : > { %v1229_v23 = vadd.f32 1.0, %v1528_v21 }
 0x6ba   : > { %v1230_v25 = vmul.f32 %v1229_v23, %v1187_v16 }
 0x6bc   : > { %v1231_v26 = vpack.c.bf16 %v1230_v25, %v1230_v25 }
 0x6be   : > { %1308 = vmatmul.bf16.vlgmr.msrb.gmra.mxu0 %v1231_v26 }
 0x73b   : > { %v1309_v28 = vpop.f32.mrf.mxu0 }
 0x73c   : > { %v1310_v29 = vadd.f32 %v1658_v27, %v1309_v28 }
 0x73e   : > { %v1313_v30 = vadd.f32 %v1310_v29, %v2142_v11 }
 0x740   : > { %1314 = vst.msk [vmem:[%s2259_s27] sm:$0xff] %vm578_vm0, %v1313_v30 }
 0x741   : > { %1760 = shalt.err (!%p1757_p5)
}
 0x742   : > { %1587 = dma.vmem_to_hbm [thread:$0]  (%p1961_p4), %s1330_s2, 128, %s1332_s14, %s1316_s30  }
 0x743   : > { %v1311_v11 = vpop.f32.mrf.mxu0 }
 0x744 PF: > { %s2261_s28 = sld [smem:[#allocation33_spill]] }
 0x745   : > { %s2262_s19 = sld [smem:[#allocation30_spill]] }
 0x74a   : > { %p1593_p6 = scmp.ge.s32.totalorder %s2261_s28, 2 }
 0x74b   : > { %s1343_s27 = sand.u32 1, %s2262_s19  }
 0x74c   : > { %p1590_p7 = pnand %p1593_p6, %p1968_p8  ;;  %s1344_s0 = scalar_lea.sflag [#allocation12], %s1343_s27 }
 0x74e   : > { %p1591_p9 = pneg %p1590_p7 }
 0x750   : > { %1798 = dma.done.wait (%p1591_p9), %s1344_s0, 128  }
 0x751   : > { %1800 = vsyncadd (%p1591_p9), %s1344_s0, 4294967168  ;;  %s30_s29 = sadd.s32 1, %s2261_s28   ;;  %s2264_s18 = sld [smem:[#allocation31_spill]] }
 0x752   : > { %p27_p10 = scmp.ge.s32.totalorder %s30_s29, 4   ;;  %s2265_s26 = sld [smem:[#allocation37_spill]] }
 0x753   : > { %s2266_s27 = sld [smem:[#allocation32_spill]]  ;;  %s2268_s24 = smov %s1807_s25 }
 0x754   : > { %s2267_s28 = sld [smem:[#allocation34_spill]]  ;;  %29 = sbr.rel (!%p27_p10) target bundleno = 10 (0xa), region = 222 }
 0x757   : > { %s2269_s25 = smov %s2264_s18 }
 0x759   :  { %1350 = vsyncpa [#allocation12], 1 }
 0x75a   :  { %1352 = vsyncpa [#allocation12 + $0x1], 1 }
 0x75b   :  { %1353 = vsyncmov [#allocation10] }
 0x75e   :  { %s1354_s21 = vpop.sfrf %1353 }
 0x75f   :  { %p1565_p4 = scmp.ne.s32.totalorder %s1354_s21, 0 }
 0x761   :  { %1358 = shalt.err (%p1565_p4)  }
 0x762   :  { %1360 = vsyncmov [#allocation10 + $0x1] }
 0x765   :  { %s1361_s2 = vpop.sfrf %1360 }
 0x766   :  { %p1566_p8 = scmp.ne.s32.totalorder %s1361_s2, 0 }
 0x768   :  { %1365 = shalt.err (%p1566_p8)  }
 0x769   :  { %1367 = vsyncmov [#allocation10 + $0x2] }
 0x76c   :  { %s1368_s14 = vpop.sfrf %1367 }
 0x76d   :  { %p1567_p11 = scmp.ne.s32.totalorder %s1368_s14, 0 }
 0x76f   :  { %1372 = shalt.err (%p1567_p11)  }
 0x770   :  { %1374 = vsyncmov [#allocation10 + $0x3] }
 0x773   :  { %s1375_s30 = vpop.sfrf %1374 }
 0x774   :  { %p1568_p12 = scmp.ne.s32.totalorder %s1375_s30, 0 }
 0x776   :  { %1379 = shalt.err (%p1568_p12)  }
 0x777   :  { %1381 = vsyncmov [#allocation10 + $0x4] }
 0x77a   :  { %s1382_s20 = vpop.sfrf %1381 }
 0x77b   :  { %p1569_p13 = scmp.ne.s32.totalorder %s1382_s20, 0 }
 0x77d   :  { %1386 = shalt.err (%p1569_p13)  }
 0x77e   :  { %1388 = vsyncmov [#allocation10 + $0x5] }
 0x781   :  { %s1389_s3 = vpop.sfrf %1388 }
 0x782   :  { %p1570_p0 = scmp.ne.s32.totalorder %s1389_s3, 0 }
 0x784   :  { %1393 = shalt.err (%p1570_p0)  }

</bundles_post_ra>
